<compile_context>
chip_gen: v6e
topology: v6e:2x2x1
jax: 0.10.0
libtpu: 0.0.40
codegen_flags: <defaults>
</compile_context>

<pallas_src>
import functools

import jax
import jax.numpy as jnp
from jax.experimental import pallas as pl
from jax.experimental.pallas import tpu as pltpu


def _dueling_q_kernel(x_ref, wih_ref, whh_ref, b_ref, fcw_ref, fcb_ref,
                      qw_ref, qb_ref, q_ref, *, seq_len, batch_pad):
    S, B = seq_len, batch_pad
    H = whh_ref.shape[0]                      # lane-padded hidden width (128)

    # Hoist every (tiny) weight into a local once -- VMEM/vreg resident for the
    # whole kernel instead of being re-read per step.
    wih = wih_ref[...]          # (D, 4H)   fused input->gates weight [i|f|g|o]
    whh = whh_ref[...]          # (H, 4H)   fused hidden->gates weight
    b = b_ref[...]              # (1, 4H)   b_ih + b_hh
    fcw = fcw_ref[...]          # (H, H)    fc.weight.T (zero-padded)
    fcb = fcb_ref[...]          # (1, H)    fc.bias (-1e30 in padded lanes)
    qw = qw_ref[...]            # (H, OP)   fused dueling head weight
    qb = qb_ref[...]            # (1, OP)   fused dueling head bias

    # Input projection hoisted off the serial recurrence path:
    # one lane-dense (S*B, D) x (D, 4H) MXU call.
    g_in = jnp.dot(x_ref[...], wih, preferred_element_type=jnp.float32) + b

    # Serial recurrence: only h @ Whh + elementwise gate math remain. S is
    # small and static -> fully unrolled; h/c and all per-step h_t stay in
    # registers (no VMEM scratch round-trip).
    h = jnp.zeros((B, H), jnp.float32)
    c = jnp.zeros((B, H), jnp.float32)
    hs = []
    for t in range(S):
        g = g_in[t * B:(t + 1) * B, :]          # full-sublane (8-row) slice
        if t > 0:                               # h0 == 0 -> skip first matmul
            g = g + jnp.dot(h, whh, preferred_element_type=jnp.float32)
        i_g = jax.nn.sigmoid(g[:, 0 * H:1 * H])  # vreg-aligned gate slices
        f_g = jax.nn.sigmoid(g[:, 1 * H:2 * H])
        g_g = jnp.tanh(g[:, 2 * H:3 * H])
        o_g = jax.nn.sigmoid(g[:, 3 * H:4 * H])
        c = f_g * c + i_g * g_g
        h = o_g * jnp.tanh(c)
        hs.append(h)

    # Dueling head, once on the whole (S*B, H) slab (rows never mix).
    h_all = jnp.concatenate(hs, axis=0)                              # (S*B, H)
    feat = jnp.maximum(h_all, 0.0)                                   # ReLU
    feat = jnp.dot(feat, fcw, preferred_element_type=jnp.float32) + fcb
    m = jnp.max(feat, axis=-1, keepdims=True)                        # softmax(dim=1)
    e = jnp.exp(feat - m)                       # padded lanes: exp(-1e30) == 0
    denom = jnp.sum(e, axis=-1, keepdims=True)
    feat = e * pl.reciprocal(denom)             # exact recip (1e-4 check holds)

    # Fully fused dueling combine: qw already encodes value + adv - mean(adv).
    # Lane-dense (S*B, 128) store -> single unmasked vst.
    q_ref[...] = jnp.dot(feat, qw, preferred_element_type=jnp.float32) + qb


def dueling_q_forward(state, params):
    S, B, D = state.shape
    H = params["whh"].shape[-1]
    A = params["aw"].shape[-1]

    HP = 128    # hidden padded to lane width: vreg-aligned gates, full-K MXU
    BP = 8      # batch padded to sublane width: full-sublane per-step state
    OP = 128    # output padded to lane width: unmasked final store

    def zpad(x, shape):
        out = jnp.zeros(shape, jnp.float32)
        return out.at[tuple(slice(0, s) for s in x.shape)].set(x)

    # Fused LSTM gate weights, order [i|f|g|o] along lanes, zero-padded to HP.
    # Zero padding is exact: padded gate lanes see 0 pre-activation, so padded
    # lanes of c/h stay exactly 0 through the whole recurrence.
    wih_cat = jnp.concatenate(
        [zpad(params["wih"][k], (D, HP)) for k in range(4)], axis=1)
    whh_cat = jnp.concatenate(
        [zpad(params["whh"][k], (HP, HP)) for k in range(4)], axis=1)
    b_cat = jnp.concatenate(
        [zpad(params["b"][k], (1, HP)) for k in range(4)], axis=1)

    # fc: zero-pad weights; padded bias lanes = -1e30 so the in-kernel softmax
    # over the padded width is exact (their exp underflows to 0).
    fcw_p = zpad(params["fcw"], (HP, HP))
    fcb_p = jnp.full((1, HP), -1e30, jnp.float32).at[:, :H].set(params["fcb"])

    # Dueling head fully folded into a single matmul:
    #   q = feat @ (aw + vw.T - mean_col(aw)) + (ab + vb - mean(ab))
    qw = params["aw"] + params["vw"].T - jnp.mean(params["aw"], axis=1, keepdims=True)
    qb = params["ab"] + params["vb"] - jnp.mean(params["ab"], axis=1, keepdims=True)
    qw_p = zpad(qw, (HP, OP))
    qb_p = zpad(qb, (1, OP))

    # Time-major flat input, batch zero-padded to BP: row t*BP + b == (t, b).
    x_flat = jnp.zeros((S, BP, D), jnp.float32).at[:, :B, :].set(state)
    x_flat = x_flat.reshape(S * BP, D)

    kernel = functools.partial(_dueling_q_kernel, seq_len=S, batch_pad=BP)

    n = S * BP
    flops = (2 * n * D * 4 * HP            # input projection
             + S * 2 * BP * HP * 4 * HP    # recurrence h @ Whh
             + 2 * n * HP * HP             # fc
             + 2 * n * HP * OP)            # fused dueling head
    transcendentals = n * (4 * HP + HP + HP)   # gate sigmoid/tanh, tanh(c), exp
    bytes_accessed = 4 * (x_flat.size + wih_cat.size + whh_cat.size + b_cat.size
                          + fcw_p.size + fcb_p.size + qw_p.size + qb_p.size
                          + n * OP)

    q_pad = pl.pallas_call(
        kernel,
        out_shape=jax.ShapeDtypeStruct((n, OP), jnp.float32),
        in_specs=[pl.BlockSpec(memory_space=pltpu.MemorySpace.VMEM)] * 8,
        out_specs=pl.BlockSpec(memory_space=pltpu.MemorySpace.VMEM),
        cost_estimate=pl.CostEstimate(flops=flops,
                                      transcendentals=transcendentals,
                                      bytes_accessed=bytes_accessed),
    )(x_flat, wih_cat, whh_cat, b_cat, fcw_p, fcb_p, qw_p, qb_p)

    # Drop padded batch rows / action lanes; row order matches
    # lstm_out.contiguous().view(-1, hidden) in the PyTorch module.
    return q_pad.reshape(S, BP, OP)[:, :B, :A].reshape(S * B, A)


def init_params(key, state_dim, hidden_dim, action_dim):
    """Deterministic synthetic params, PyTorch-style U(-1/sqrt(H), 1/sqrt(H))."""
    ks = jax.random.split(key, 10)
    bound = 1.0 / (hidden_dim ** 0.5)

    def u(k, shape):
        return jax.random.uniform(k, shape, jnp.float32, -bound, bound)

    # nn.LSTM weights, gate order [i, f, g, o], stored pre-transposed (in, out).
    wih = u(ks[0], (4, state_dim, hidden_dim))
    whh = u(ks[1], (4, hidden_dim, hidden_dim))
    b = u(ks[2], (4, 1, hidden_dim)) + u(ks[3], (4, 1, hidden_dim))  # b_ih + b_hh
    fcw = u(ks[4], (hidden_dim, hidden_dim))          # fc.weight.T
    fcb = u(ks[5], (1, hidden_dim))
    vw = u(ks[6], (1, hidden_dim))                    # value_stream.weight (row)
    vb = u(ks[7], (1, 1))
    aw = u(ks[8], (hidden_dim, action_dim))           # advantage_stream.weight.T
    ab = u(ks[9], (1, action_dim))
    return dict(wih=wih, whh=whh, b=b, fcw=fcw, fcb=fcb,
                vw=vw, vb=vb, aw=aw, ab=ab)


def reference_forward(state, p):
    """Pure-JAX mirror of the PyTorch forward, for correctness checking."""
    S, B, _ = state.shape
    H = p["whh"].shape[-1]
    h = jnp.zeros((B, H), jnp.float32)
    c = jnp.zeros((B, H), jnp.float32)
    outs = []
    for t in range(S):
        xt = state[t]
        gs = [xt @ p["wih"][k] + h @ p["whh"][k] + p["b"][k] for k in range(4)]
        i = jax.nn.sigmoid(gs[0])
        f = jax.nn.sigmoid(gs[1])
        g = jnp.tanh(gs[2])
        o = jax.nn.sigmoid(gs[3])
        c = f * c + i * g
        h = o * jnp.tanh(c)
        outs.append(h)
    lstm_out = jnp.stack(outs, 0).reshape(S * B, H)
    feat = jax.nn.relu(lstm_out)
    feat = feat @ p["fcw"] + p["fcb"]
    feat = jax.nn.softmax(feat, axis=1)
    value = jnp.sum(feat * p["vw"], axis=-1, keepdims=True) + p["vb"]
    adv = feat @ p["aw"] + p["ab"]
    return value + (adv - adv.mean(axis=1, keepdims=True))


if __name__ == "__main__":
    state_dim, hidden_dim, action_dim = 16, 32, 4
    seq_len, batch = 8, 2

    key = jax.random.PRNGKey(0)
    kp, kx = jax.random.split(key)
    params = init_params(kp, state_dim, hidden_dim, action_dim)
    state = jax.random.normal(kx, (seq_len, batch, state_dim), jnp.float32)

    q = dueling_q_forward(state, params)
    q = jax.block_until_ready(q)

    ref = reference_forward(state, params)
    assert q.shape == (seq_len * batch, action_dim), q.shape
    assert jnp.allclose(q, ref, atol=1e-4, rtol=1e-4), \
        float(jnp.max(jnp.abs(q - ref)))
    print("KERNEL_OK")
</pallas_src>

<mosaic_0001>
module attributes {stable_mosaic.version = 11 : i64} {
  func.func @_dueling_q_kernel(%arg0: memref<64x16xf32, #tpu.memory_space<vmem>>, %arg1: memref<16x512xf32, #tpu.memory_space<vmem>>, %arg2: memref<128x512xf32, #tpu.memory_space<vmem>>, %arg3: memref<1x512xf32, #tpu.memory_space<vmem>>, %arg4: memref<128x128xf32, #tpu.memory_space<vmem>>, %arg5: memref<1x128xf32, #tpu.memory_space<vmem>>, %arg6: memref<128x128xf32, #tpu.memory_space<vmem>>, %arg7: memref<1x128xf32, #tpu.memory_space<vmem>>, %arg8: memref<64x128xf32, #tpu.memory_space<vmem>>) attributes {dimension_semantics = [], scalar_prefetch = 0 : i64, scratch_operands = 0 : i64, tpu.core_type = #tpu.core_type<tc>} {
    %c0 = arith.constant 0 : index
    %c0_0 = arith.constant 0 : index
    %0 = vector.load %arg1[%c0, %c0_0] : memref<16x512xf32, #tpu.memory_space<vmem>>, vector<16x512xf32>
    %c0_1 = arith.constant 0 : index
    %c0_2 = arith.constant 0 : index
    %1 = vector.load %arg2[%c0_1, %c0_2] : memref<128x512xf32, #tpu.memory_space<vmem>>, vector<128x512xf32>
    %c0_3 = arith.constant 0 : index
    %c0_4 = arith.constant 0 : index
    %2 = vector.load %arg3[%c0_3, %c0_4] : memref<1x512xf32, #tpu.memory_space<vmem>>, vector<1x512xf32>
    %c0_5 = arith.constant 0 : index
    %c0_6 = arith.constant 0 : index
    %3 = vector.load %arg4[%c0_5, %c0_6] : memref<128x128xf32, #tpu.memory_space<vmem>>, vector<128x128xf32>
    %c0_7 = arith.constant 0 : index
    %c0_8 = arith.constant 0 : index
    %4 = vector.load %arg5[%c0_7, %c0_8] : memref<1x128xf32, #tpu.memory_space<vmem>>, vector<1x128xf32>
    %c0_9 = arith.constant 0 : index
    %c0_10 = arith.constant 0 : index
    %5 = vector.load %arg6[%c0_9, %c0_10] : memref<128x128xf32, #tpu.memory_space<vmem>>, vector<128x128xf32>
    %c0_11 = arith.constant 0 : index
    %c0_12 = arith.constant 0 : index
    %6 = vector.load %arg7[%c0_11, %c0_12] : memref<1x128xf32, #tpu.memory_space<vmem>>, vector<1x128xf32>
    %c0_13 = arith.constant 0 : index
    %c0_14 = arith.constant 0 : index
    %7 = vector.load %arg0[%c0_13, %c0_14] : memref<64x16xf32, #tpu.memory_space<vmem>>, vector<64x16xf32>
    %cst = arith.constant dense<0.000000e+00> : vector<64x512xf32>
    %8 = tpu.matmul %7, %0, %cst {dimension_numbers = #tpu.dot_dimension_numbers<[1], [0], [0], [1], [0, 0, 1, 1], [], []>} : vector<64x16xf32>, vector<16x512xf32>, vector<64x512xf32> -> vector<64x512xf32>
    %9 = vector.broadcast %2 : vector<1x512xf32> to vector<64x512xf32>
    %10 = arith.addf %8, %9 : vector<64x512xf32>
    %cst_15 = arith.constant 0.000000e+00 : f32
    %11 = vector.broadcast %cst_15 : f32 to vector<8x128xf32>
    %12 = vector.extract_strided_slice %10 {offsets = [0, 0], sizes = [8, 512], strides = [1, 1]} : vector<64x512xf32> to vector<8x512xf32>
    %13 = vector.extract_strided_slice %12 {offsets = [0, 0], sizes = [8, 128], strides = [1, 1]} : vector<8x512xf32> to vector<8x128xf32>
    %14 = arith.negf %13 : vector<8x128xf32>
    %15 = math.exp %14 : vector<8x128xf32>
    %cst_16 = arith.constant 1.000000e+00 : f32
    %16 = vector.broadcast %cst_16 : f32 to vector<8x128xf32>
    %17 = arith.addf %16, %15 : vector<8x128xf32>
    %18 = arith.divf %16, %17 : vector<8x128xf32>
    %19 = vector.extract_strided_slice %12 {offsets = [0, 128], sizes = [8, 128], strides = [1, 1]} : vector<8x512xf32> to vector<8x128xf32>
    %20 = arith.negf %19 : vector<8x128xf32>
    %21 = math.exp %20 : vector<8x128xf32>
    %cst_17 = arith.constant 1.000000e+00 : f32
    %22 = vector.broadcast %cst_17 : f32 to vector<8x128xf32>
    %23 = arith.addf %22, %21 : vector<8x128xf32>
    %24 = arith.divf %22, %23 : vector<8x128xf32>
    %25 = vector.extract_strided_slice %12 {offsets = [0, 256], sizes = [8, 128], strides = [1, 1]} : vector<8x512xf32> to vector<8x128xf32>
    %26 = math.tanh %25 : vector<8x128xf32>
    %27 = vector.extract_strided_slice %12 {offsets = [0, 384], sizes = [8, 128], strides = [1, 1]} : vector<8x512xf32> to vector<8x128xf32>
    %28 = arith.negf %27 : vector<8x128xf32>
    %29 = math.exp %28 : vector<8x128xf32>
    %cst_18 = arith.constant 1.000000e+00 : f32
    %30 = vector.broadcast %cst_18 : f32 to vector<8x128xf32>
    %31 = arith.addf %30, %29 : vector<8x128xf32>
    %32 = arith.divf %30, %31 : vector<8x128xf32>
    %33 = arith.mulf %24, %11 : vector<8x128xf32>
    %34 = arith.mulf %18, %26 : vector<8x128xf32>
    %35 = arith.addf %33, %34 : vector<8x128xf32>
    %36 = math.tanh %35 : vector<8x128xf32>
    %37 = arith.mulf %32, %36 : vector<8x128xf32>
    %38 = vector.extract_strided_slice %10 {offsets = [8, 0], sizes = [8, 512], strides = [1, 1]} : vector<64x512xf32> to vector<8x512xf32>
    %cst_19 = arith.constant dense<0.000000e+00> : vector<8x512xf32>
    %39 = tpu.matmul %37, %1, %cst_19 {dimension_numbers = #tpu.dot_dimension_numbers<[1], [0], [0], [1], [0, 0, 1, 1], [], []>} : vector<8x128xf32>, vector<128x512xf32>, vector<8x512xf32> -> vector<8x512xf32>
    %40 = arith.addf %38, %39 : vector<8x512xf32>
    %41 = vector.extract_strided_slice %40 {offsets = [0, 0], sizes = [8, 128], strides = [1, 1]} : vector<8x512xf32> to vector<8x128xf32>
    %42 = arith.negf %41 : vector<8x128xf32>
    %43 = math.exp %42 : vector<8x128xf32>
    %cst_20 = arith.constant 1.000000e+00 : f32
    %44 = vector.broadcast %cst_20 : f32 to vector<8x128xf32>
    %45 = arith.addf %44, %43 : vector<8x128xf32>
    %46 = arith.divf %44, %45 : vector<8x128xf32>
    %47 = vector.extract_strided_slice %40 {offsets = [0, 128], sizes = [8, 128], strides = [1, 1]} : vector<8x512xf32> to vector<8x128xf32>
    %48 = arith.negf %47 : vector<8x128xf32>
    %49 = math.exp %48 : vector<8x128xf32>
    %cst_21 = arith.constant 1.000000e+00 : f32
    %50 = vector.broadcast %cst_21 : f32 to vector<8x128xf32>
    %51 = arith.addf %50, %49 : vector<8x128xf32>
    %52 = arith.divf %50, %51 : vector<8x128xf32>
    %53 = vector.extract_strided_slice %40 {offsets = [0, 256], sizes = [8, 128], strides = [1, 1]} : vector<8x512xf32> to vector<8x128xf32>
    %54 = math.tanh %53 : vector<8x128xf32>
    %55 = vector.extract_strided_slice %40 {offsets = [0, 384], sizes = [8, 128], strides = [1, 1]} : vector<8x512xf32> to vector<8x128xf32>
    %56 = arith.negf %55 : vector<8x128xf32>
    %57 = math.exp %56 : vector<8x128xf32>
    %cst_22 = arith.constant 1.000000e+00 : f32
    %58 = vector.broadcast %cst_22 : f32 to vector<8x128xf32>
    %59 = arith.addf %58, %57 : vector<8x128xf32>
    %60 = arith.divf %58, %59 : vector<8x128xf32>
    %61 = arith.mulf %52, %35 : vector<8x128xf32>
    %62 = arith.mulf %46, %54 : vector<8x128xf32>
    %63 = arith.addf %61, %62 : vector<8x128xf32>
    %64 = math.tanh %63 : vector<8x128xf32>
    %65 = arith.mulf %60, %64 : vector<8x128xf32>
    %66 = vector.extract_strided_slice %10 {offsets = [16, 0], sizes = [8, 512], strides = [1, 1]} : vector<64x512xf32> to vector<8x512xf32>
    %cst_23 = arith.constant dense<0.000000e+00> : vector<8x512xf32>
    %67 = tpu.matmul %65, %1, %cst_23 {dimension_numbers = #tpu.dot_dimension_numbers<[1], [0], [0], [1], [0, 0, 1, 1], [], []>} : vector<8x128xf32>, vector<128x512xf32>, vector<8x512xf32> -> vector<8x512xf32>
    %68 = arith.addf %66, %67 : vector<8x512xf32>
    %69 = vector.extract_strided_slice %68 {offsets = [0, 0], sizes = [8, 128], strides = [1, 1]} : vector<8x512xf32> to vector<8x128xf32>
    %70 = arith.negf %69 : vector<8x128xf32>
    %71 = math.exp %70 : vector<8x128xf32>
    %cst_24 = arith.constant 1.000000e+00 : f32
    %72 = vector.broadcast %cst_24 : f32 to vector<8x128xf32>
    %73 = arith.addf %72, %71 : vector<8x128xf32>
    %74 = arith.divf %72, %73 : vector<8x128xf32>
    %75 = vector.extract_strided_slice %68 {offsets = [0, 128], sizes = [8, 128], strides = [1, 1]} : vector<8x512xf32> to vector<8x128xf32>
    %76 = arith.negf %75 : vector<8x128xf32>
    %77 = math.exp %76 : vector<8x128xf32>
    %cst_25 = arith.constant 1.000000e+00 : f32
    %78 = vector.broadcast %cst_25 : f32 to vector<8x128xf32>
    %79 = arith.addf %78, %77 : vector<8x128xf32>
    %80 = arith.divf %78, %79 : vector<8x128xf32>
    %81 = vector.extract_strided_slice %68 {offsets = [0, 256], sizes = [8, 128], strides = [1, 1]} : vector<8x512xf32> to vector<8x128xf32>
    %82 = math.tanh %81 : vector<8x128xf32>
    %83 = vector.extract_strided_slice %68 {offsets = [0, 384], sizes = [8, 128], strides = [1, 1]} : vector<8x512xf32> to vector<8x128xf32>
    %84 = arith.negf %83 : vector<8x128xf32>
    %85 = math.exp %84 : vector<8x128xf32>
    %cst_26 = arith.constant 1.000000e+00 : f32
    %86 = vector.broadcast %cst_26 : f32 to vector<8x128xf32>
    %87 = arith.addf %86, %85 : vector<8x128xf32>
    %88 = arith.divf %86, %87 : vector<8x128xf32>
    %89 = arith.mulf %80, %63 : vector<8x128xf32>
    %90 = arith.mulf %74, %82 : vector<8x128xf32>
    %91 = arith.addf %89, %90 : vector<8x128xf32>
    %92 = math.tanh %91 : vector<8x128xf32>
    %93 = arith.mulf %88, %92 : vector<8x128xf32>
    %94 = vector.extract_strided_slice %10 {offsets = [24, 0], sizes = [8, 512], strides = [1, 1]} : vector<64x512xf32> to vector<8x512xf32>
    %cst_27 = arith.constant dense<0.000000e+00> : vector<8x512xf32>
    %95 = tpu.matmul %93, %1, %cst_27 {dimension_numbers = #tpu.dot_dimension_numbers<[1], [0], [0], [1], [0, 0, 1, 1], [], []>} : vector<8x128xf32>, vector<128x512xf32>, vector<8x512xf32> -> vector<8x512xf32>
    %96 = arith.addf %94, %95 : vector<8x512xf32>
    %97 = vector.extract_strided_slice %96 {offsets = [0, 0], sizes = [8, 128], strides = [1, 1]} : vector<8x512xf32> to vector<8x128xf32>
    %98 = arith.negf %97 : vector<8x128xf32>
    %99 = math.exp %98 : vector<8x128xf32>
    %cst_28 = arith.constant 1.000000e+00 : f32
    %100 = vector.broadcast %cst_28 : f32 to vector<8x128xf32>
    %101 = arith.addf %100, %99 : vector<8x128xf32>
    %102 = arith.divf %100, %101 : vector<8x128xf32>
    %103 = vector.extract_strided_slice %96 {offsets = [0, 128], sizes = [8, 128], strides = [1, 1]} : vector<8x512xf32> to vector<8x128xf32>
    %104 = arith.negf %103 : vector<8x128xf32>
    %105 = math.exp %104 : vector<8x128xf32>
    %cst_29 = arith.constant 1.000000e+00 : f32
    %106 = vector.broadcast %cst_29 : f32 to vector<8x128xf32>
    %107 = arith.addf %106, %105 : vector<8x128xf32>
    %108 = arith.divf %106, %107 : vector<8x128xf32>
    %109 = vector.extract_strided_slice %96 {offsets = [0, 256], sizes = [8, 128], strides = [1, 1]} : vector<8x512xf32> to vector<8x128xf32>
    %110 = math.tanh %109 : vector<8x128xf32>
    %111 = vector.extract_strided_slice %96 {offsets = [0, 384], sizes = [8, 128], strides = [1, 1]} : vector<8x512xf32> to vector<8x128xf32>
    %112 = arith.negf %111 : vector<8x128xf32>
    %113 = math.exp %112 : vector<8x128xf32>
    %cst_30 = arith.constant 1.000000e+00 : f32
    %114 = vector.broadcast %cst_30 : f32 to vector<8x128xf32>
    %115 = arith.addf %114, %113 : vector<8x128xf32>
    %116 = arith.divf %114, %115 : vector<8x128xf32>
    %117 = arith.mulf %108, %91 : vector<8x128xf32>
    %118 = arith.mulf %102, %110 : vector<8x128xf32>
    %119 = arith.addf %117, %118 : vector<8x128xf32>
    %120 = math.tanh %119 : vector<8x128xf32>
    %121 = arith.mulf %116, %120 : vector<8x128xf32>
    %122 = vector.extract_strided_slice %10 {offsets = [32, 0], sizes = [8, 512], strides = [1, 1]} : vector<64x512xf32> to vector<8x512xf32>
    %cst_31 = arith.constant dense<0.000000e+00> : vector<8x512xf32>
    %123 = tpu.matmul %121, %1, %cst_31 {dimension_numbers = #tpu.dot_dimension_numbers<[1], [0], [0], [1], [0, 0, 1, 1], [], []>} : vector<8x128xf32>, vector<128x512xf32>, vector<8x512xf32> -> vector<8x512xf32>
    %124 = arith.addf %122, %123 : vector<8x512xf32>
    %125 = vector.extract_strided_slice %124 {offsets = [0, 0], sizes = [8, 128], strides = [1, 1]} : vector<8x512xf32> to vector<8x128xf32>
    %126 = arith.negf %125 : vector<8x128xf32>
    %127 = math.exp %126 : vector<8x128xf32>
    %cst_32 = arith.constant 1.000000e+00 : f32
    %128 = vector.broadcast %cst_32 : f32 to vector<8x128xf32>
    %129 = arith.addf %128, %127 : vector<8x128xf32>
    %130 = arith.divf %128, %129 : vector<8x128xf32>
    %131 = vector.extract_strided_slice %124 {offsets = [0, 128], sizes = [8, 128], strides = [1, 1]} : vector<8x512xf32> to vector<8x128xf32>
    %132 = arith.negf %131 : vector<8x128xf32>
    %133 = math.exp %132 : vector<8x128xf32>
    %cst_33 = arith.constant 1.000000e+00 : f32
    %134 = vector.broadcast %cst_33 : f32 to vector<8x128xf32>
    %135 = arith.addf %134, %133 : vector<8x128xf32>
    %136 = arith.divf %134, %135 : vector<8x128xf32>
    %137 = vector.extract_strided_slice %124 {offsets = [0, 256], sizes = [8, 128], strides = [1, 1]} : vector<8x512xf32> to vector<8x128xf32>
    %138 = math.tanh %137 : vector<8x128xf32>
    %139 = vector.extract_strided_slice %124 {offsets = [0, 384], sizes = [8, 128], strides = [1, 1]} : vector<8x512xf32> to vector<8x128xf32>
    %140 = arith.negf %139 : vector<8x128xf32>
    %141 = math.exp %140 : vector<8x128xf32>
    %cst_34 = arith.constant 1.000000e+00 : f32
    %142 = vector.broadcast %cst_34 : f32 to vector<8x128xf32>
    %143 = arith.addf %142, %141 : vector<8x128xf32>
    %144 = arith.divf %142, %143 : vector<8x128xf32>
    %145 = arith.mulf %136, %119 : vector<8x128xf32>
    %146 = arith.mulf %130, %138 : vector<8x128xf32>
    %147 = arith.addf %145, %146 : vector<8x128xf32>
    %148 = math.tanh %147 : vector<8x128xf32>
    %149 = arith.mulf %144, %148 : vector<8x128xf32>
    %150 = vector.extract_strided_slice %10 {offsets = [40, 0], sizes = [8, 512], strides = [1, 1]} : vector<64x512xf32> to vector<8x512xf32>
    %cst_35 = arith.constant dense<0.000000e+00> : vector<8x512xf32>
    %151 = tpu.matmul %149, %1, %cst_35 {dimension_numbers = #tpu.dot_dimension_numbers<[1], [0], [0], [1], [0, 0, 1, 1], [], []>} : vector<8x128xf32>, vector<128x512xf32>, vector<8x512xf32> -> vector<8x512xf32>
    %152 = arith.addf %150, %151 : vector<8x512xf32>
    %153 = vector.extract_strided_slice %152 {offsets = [0, 0], sizes = [8, 128], strides = [1, 1]} : vector<8x512xf32> to vector<8x128xf32>
    %154 = arith.negf %153 : vector<8x128xf32>
    %155 = math.exp %154 : vector<8x128xf32>
    %cst_36 = arith.constant 1.000000e+00 : f32
    %156 = vector.broadcast %cst_36 : f32 to vector<8x128xf32>
    %157 = arith.addf %156, %155 : vector<8x128xf32>
    %158 = arith.divf %156, %157 : vector<8x128xf32>
    %159 = vector.extract_strided_slice %152 {offsets = [0, 128], sizes = [8, 128], strides = [1, 1]} : vector<8x512xf32> to vector<8x128xf32>
    %160 = arith.negf %159 : vector<8x128xf32>
    %161 = math.exp %160 : vector<8x128xf32>
    %cst_37 = arith.constant 1.000000e+00 : f32
    %162 = vector.broadcast %cst_37 : f32 to vector<8x128xf32>
    %163 = arith.addf %162, %161 : vector<8x128xf32>
    %164 = arith.divf %162, %163 : vector<8x128xf32>
    %165 = vector.extract_strided_slice %152 {offsets = [0, 256], sizes = [8, 128], strides = [1, 1]} : vector<8x512xf32> to vector<8x128xf32>
    %166 = math.tanh %165 : vector<8x128xf32>
    %167 = vector.extract_strided_slice %152 {offsets = [0, 384], sizes = [8, 128], strides = [1, 1]} : vector<8x512xf32> to vector<8x128xf32>
    %168 = arith.negf %167 : vector<8x128xf32>
    %169 = math.exp %168 : vector<8x128xf32>
    %cst_38 = arith.constant 1.000000e+00 : f32
    %170 = vector.broadcast %cst_38 : f32 to vector<8x128xf32>
    %171 = arith.addf %170, %169 : vector<8x128xf32>
    %172 = arith.divf %170, %171 : vector<8x128xf32>
    %173 = arith.mulf %164, %147 : vector<8x128xf32>
    %174 = arith.mulf %158, %166 : vector<8x128xf32>
    %175 = arith.addf %173, %174 : vector<8x128xf32>
    %176 = math.tanh %175 : vector<8x128xf32>
    %177 = arith.mulf %172, %176 : vector<8x128xf32>
    %178 = vector.extract_strided_slice %10 {offsets = [48, 0], sizes = [8, 512], strides = [1, 1]} : vector<64x512xf32> to vector<8x512xf32>
    %cst_39 = arith.constant dense<0.000000e+00> : vector<8x512xf32>
    %179 = tpu.matmul %177, %1, %cst_39 {dimension_numbers = #tpu.dot_dimension_numbers<[1], [0], [0], [1], [0, 0, 1, 1], [], []>} : vector<8x128xf32>, vector<128x512xf32>, vector<8x512xf32> -> vector<8x512xf32>
    %180 = arith.addf %178, %179 : vector<8x512xf32>
    %181 = vector.extract_strided_slice %180 {offsets = [0, 0], sizes = [8, 128], strides = [1, 1]} : vector<8x512xf32> to vector<8x128xf32>
    %182 = arith.negf %181 : vector<8x128xf32>
    %183 = math.exp %182 : vector<8x128xf32>
    %cst_40 = arith.constant 1.000000e+00 : f32
    %184 = vector.broadcast %cst_40 : f32 to vector<8x128xf32>
    %185 = arith.addf %184, %183 : vector<8x128xf32>
    %186 = arith.divf %184, %185 : vector<8x128xf32>
    %187 = vector.extract_strided_slice %180 {offsets = [0, 128], sizes = [8, 128], strides = [1, 1]} : vector<8x512xf32> to vector<8x128xf32>
    %188 = arith.negf %187 : vector<8x128xf32>
    %189 = math.exp %188 : vector<8x128xf32>
    %cst_41 = arith.constant 1.000000e+00 : f32
    %190 = vector.broadcast %cst_41 : f32 to vector<8x128xf32>
    %191 = arith.addf %190, %189 : vector<8x128xf32>
    %192 = arith.divf %190, %191 : vector<8x128xf32>
    %193 = vector.extract_strided_slice %180 {offsets = [0, 256], sizes = [8, 128], strides = [1, 1]} : vector<8x512xf32> to vector<8x128xf32>
    %194 = math.tanh %193 : vector<8x128xf32>
    %195 = vector.extract_strided_slice %180 {offsets = [0, 384], sizes = [8, 128], strides = [1, 1]} : vector<8x512xf32> to vector<8x128xf32>
    %196 = arith.negf %195 : vector<8x128xf32>
    %197 = math.exp %196 : vector<8x128xf32>
    %cst_42 = arith.constant 1.000000e+00 : f32
    %198 = vector.broadcast %cst_42 : f32 to vector<8x128xf32>
    %199 = arith.addf %198, %197 : vector<8x128xf32>
    %200 = arith.divf %198, %199 : vector<8x128xf32>
    %201 = arith.mulf %192, %175 : vector<8x128xf32>
    %202 = arith.mulf %186, %194 : vector<8x128xf32>
    %203 = arith.addf %201, %202 : vector<8x128xf32>
    %204 = math.tanh %203 : vector<8x128xf32>
    %205 = arith.mulf %200, %204 : vector<8x128xf32>
    %206 = vector.extract_strided_slice %10 {offsets = [56, 0], sizes = [8, 512], strides = [1, 1]} : vector<64x512xf32> to vector<8x512xf32>
    %cst_43 = arith.constant dense<0.000000e+00> : vector<8x512xf32>
    %207 = tpu.matmul %205, %1, %cst_43 {dimension_numbers = #tpu.dot_dimension_numbers<[1], [0], [0], [1], [0, 0, 1, 1], [], []>} : vector<8x128xf32>, vector<128x512xf32>, vector<8x512xf32> -> vector<8x512xf32>
    %208 = arith.addf %206, %207 : vector<8x512xf32>
    %209 = vector.extract_strided_slice %208 {offsets = [0, 0], sizes = [8, 128], strides = [1, 1]} : vector<8x512xf32> to vector<8x128xf32>
    %210 = arith.negf %209 : vector<8x128xf32>
    %211 = math.exp %210 : vector<8x128xf32>
    %cst_44 = arith.constant 1.000000e+00 : f32
    %212 = vector.broadcast %cst_44 : f32 to vector<8x128xf32>
    %213 = arith.addf %212, %211 : vector<8x128xf32>
    %214 = arith.divf %212, %213 : vector<8x128xf32>
    %215 = vector.extract_strided_slice %208 {offsets = [0, 128], sizes = [8, 128], strides = [1, 1]} : vector<8x512xf32> to vector<8x128xf32>
    %216 = arith.negf %215 : vector<8x128xf32>
    %217 = math.exp %216 : vector<8x128xf32>
    %cst_45 = arith.constant 1.000000e+00 : f32
    %218 = vector.broadcast %cst_45 : f32 to vector<8x128xf32>
    %219 = arith.addf %218, %217 : vector<8x128xf32>
    %220 = arith.divf %218, %219 : vector<8x128xf32>
    %221 = vector.extract_strided_slice %208 {offsets = [0, 256], sizes = [8, 128], strides = [1, 1]} : vector<8x512xf32> to vector<8x128xf32>
    %222 = math.tanh %221 : vector<8x128xf32>
    %223 = vector.extract_strided_slice %208 {offsets = [0, 384], sizes = [8, 128], strides = [1, 1]} : vector<8x512xf32> to vector<8x128xf32>
    %224 = arith.negf %223 : vector<8x128xf32>
    %225 = math.exp %224 : vector<8x128xf32>
    %cst_46 = arith.constant 1.000000e+00 : f32
    %226 = vector.broadcast %cst_46 : f32 to vector<8x128xf32>
    %227 = arith.addf %226, %225 : vector<8x128xf32>
    %228 = arith.divf %226, %227 : vector<8x128xf32>
    %229 = arith.mulf %220, %203 : vector<8x128xf32>
    %230 = arith.mulf %214, %222 : vector<8x128xf32>
    %231 = arith.addf %229, %230 : vector<8x128xf32>
    %232 = math.tanh %231 : vector<8x128xf32>
    %233 = arith.mulf %228, %232 : vector<8x128xf32>
    %234 = tpu.concatenate %37, %65, %93, %121, %149, %177, %205, %233 in 0 : vector<8x128xf32>, vector<8x128xf32>, vector<8x128xf32>, vector<8x128xf32>, vector<8x128xf32>, vector<8x128xf32>, vector<8x128xf32>, vector<8x128xf32> -> vector<64x128xf32>
    %cst_47 = arith.constant 0.000000e+00 : f32
    %235 = vector.broadcast %cst_47 : f32 to vector<64x128xf32>
    %236 = arith.maximumf %234, %235 : vector<64x128xf32>
    %cst_48 = arith.constant dense<0.000000e+00> : vector<64x128xf32>
    %237 = tpu.matmul %236, %3, %cst_48 {dimension_numbers = #tpu.dot_dimension_numbers<[1], [0], [0], [1], [0, 0, 1, 1], [], []>} : vector<64x128xf32>, vector<128x128xf32>, vector<64x128xf32> -> vector<64x128xf32>
    %238 = vector.broadcast %4 : vector<1x128xf32> to vector<64x128xf32>
    %239 = arith.addf %237, %238 : vector<64x128xf32>
    %cst_49 = arith.constant dense<0xFF800000> : vector<64xf32>
    %240 = vector.multi_reduction <maximumf>, %239, %cst_49 [1] : vector<64x128xf32> to vector<64xf32>
    %241 = vector.shape_cast %240 : vector<64xf32> to vector<64x1xf32>
    %242 = vector.broadcast %241 : vector<64x1xf32> to vector<64x128xf32>
    %243 = arith.subf %239, %242 : vector<64x128xf32>
    %244 = math.exp %243 : vector<64x128xf32>
    %cst_50 = arith.constant dense<0.000000e+00> : vector<64xf32>
    %245 = vector.multi_reduction <add>, %244, %cst_50 [1] : vector<64x128xf32> to vector<64xf32>
    %246 = vector.shape_cast %245 : vector<64xf32> to vector<64x1xf32>
    %247 = tpu.reciprocal %246 : vector<64x1xf32> -> vector<64x1xf32>
    %248 = vector.broadcast %247 : vector<64x1xf32> to vector<64x128xf32>
    %249 = arith.mulf %244, %248 : vector<64x128xf32>
    %cst_51 = arith.constant dense<0.000000e+00> : vector<64x128xf32>
    %250 = tpu.matmul %249, %5, %cst_51 {dimension_numbers = #tpu.dot_dimension_numbers<[1], [0], [0], [1], [0, 0, 1, 1], [], []>} : vector<64x128xf32>, vector<128x128xf32>, vector<64x128xf32> -> vector<64x128xf32>
    %251 = vector.broadcast %6 : vector<1x128xf32> to vector<64x128xf32>
    %252 = arith.addf %250, %251 : vector<64x128xf32>
    %c0_52 = arith.constant 0 : index
    %c0_53 = arith.constant 0 : index
    %253 = vector.load %arg8[%c0_52, %c0_53] : memref<64x128xf32, #tpu.memory_space<vmem>>, vector<64x128xf32>
    tpu.vector_store %arg8[%c0_52, %c0_53], %252 {strides = array<i32>} : memref<64x128xf32, #tpu.memory_space<vmem>>, vector<64x128xf32>,
    return
  }
}

</mosaic_0001>

<bundles_post_ra>
// kernel: tpu_custom_call.1
= control target key start
LH: loop header
LB: loop body
LE: loop exit
PB: predicated region body
PF: predicated region fallthrough
CT: control target
= control target key end

     0   :  { %13 = vsyncpa [#allocation3], 0  ;;  %s3583_s0 = inlined_call_operand.vmem [shape: f32[64,16], index: 0, kind: input, shape index: {}]   ;;  %s3584_s1 = inlined_call_operand.vmem [shape: f32[16,512], index: 1, kind: input, shape index: {}]   ;;  %s3585_s2 = inlined_call_operand.hbm [shape: f32[128,512], index: 2, kind: input, shape index: {}]   ;;  %s3586_s3 = inlined_call_operand.vmem [shape: f32[1,512], index: 3, kind: input, shape index: {}]   ;;  %s3587_s4 = inlined_call_operand.hbm [shape: f32[128,128], index: 4, kind: input, shape index: {}]   ;;  %s3588_s5 = inlined_call_operand.vmem [shape: f32[1,128], index: 5, kind: input, shape index: {}]   ;;  %s3589_s6 = inlined_call_operand.hbm [shape: f32[128,128], index: 6, kind: input, shape index: {}]   ;;  %s3590_s7 = inlined_call_operand.vmem [shape: f32[1,128], index: 7, kind: input, shape index: {}]   ;;  %s3591_s8 = inlined_call_operand.hbm [shape: f32[64,128], index: 8, kind: output, shape index: {}]  }
   0x1   :  { %14 = vsyncpa [#allocation6], 0 }
   0x2   :  { %15 = vsyncpa [#allocation4], 0  ;;  %s2497_s27 = smov [#allocation5]  }
   0x3   :  { %s39_s28 = sshll.u32 %s2497_s27, 4  ;;  %s40_s28 = int_to_ptr.vmem [resolvable:$true] %s39_s28 }
   0x4   :  { %s2419_s29 = scalar_lea.vmem %s40_s28, 2048  ;;  %p2424_p1 = scmp.lt.s32.totalorder %s40_s28, %s40_s28 }
   0x5   :  { %p2420_p0 = scmp.ne.s32.totalorder %s40_s28, %s2419_s29  ;;  %p2425_p2 = scmp.lt.s32.totalorder %s2419_s29, %s2419_s29 }
   0x7   :  { %p2426_p3 = por %p2425_p2, %p2424_p1 }
   0x9   :  { %p2427_p4 = pnand %p2426_p3, %p2420_p0 }
   0xb   :  { %2430 = shalt.err (!%p2427_p4)
}
   0xc   :  { %s2498_s30 = smov 128   ;;  %s2499_s9 = smov 8  }
   0xd   :  { %45 = dma.hbm_to_vmem [thread:$0]  %s3587_s4, 2048, %s40_s28, [#allocation6], %s2498_s30, %s2498_s30, %s2499_s9  }
   0xe   :  { %s2500_s12 = smov [#allocation2]  }
   0xf   :  { %s25_s13 = sshll.u32 %s2500_s12, 4  ;;  %s26_s13 = int_to_ptr.vmem [resolvable:$true] %s25_s13 }
  0x10   :  { %s2439_s14 = scalar_lea.vmem %s26_s13, 8192  ;;  %p2444_p6 = scmp.lt.s32.totalorder %s26_s13, %s26_s13 }
  0x11   :  { %p2440_p5 = scmp.ne.s32.totalorder %s26_s13, %s2439_s14  ;;  %p2445_p7 = scmp.lt.s32.totalorder %s2439_s14, %s2439_s14 }
  0x13   :  { %p2446_p8 = por %p2445_p7, %p2444_p6 }
  0x15   :  { %p2447_p9 = pnand %p2446_p8, %p2440_p5 }
  0x17   :  { %2450 = shalt.err (!%p2447_p9)
}
  0x18   :  { %s2501_s15 = smov 512   ;;  %s2502_s16 = smov 32  }
  0x19   :  { %31 = dma.hbm_to_vmem [thread:$0]  %s3585_s2, 8192, %s26_s13, [#allocation3], %s2501_s15, %s2501_s15, %s2502_s16  }
  0x1a   :  { %s2503_s19 = smov [#allocation7]  }
  0x1b   :  { %s53_s20 = sshll.u32 %s2503_s19, 4  ;;  %s54_s20 = int_to_ptr.vmem [resolvable:$true] %s53_s20 }
  0x1c   :  { %s2459_s4 = scalar_lea.vmem %s54_s20, 2048  ;;  %p2464_p11 = scmp.lt.s32.totalorder %s54_s20, %s54_s20 }
  0x1d   :  { %p2460_p10 = scmp.ne.s32.totalorder %s54_s20, %s2459_s4  ;;  %p2465_p12 = scmp.lt.s32.totalorder %s2459_s4, %s2459_s4 }
  0x1f   :  { %p2466_p13 = por %p2465_p12, %p2464_p11 }
  0x21   :  { %p2467_p0 = pnand %p2466_p13, %p2460_p10 }
  0x23   :  { %2470 = shalt.err (!%p2467_p0)
}
  0x24   :  { %59 = dma.hbm_to_vmem [thread:$0]  %s3589_s6, 2048, %s54_s20, [#allocation6], %s2498_s30, %s2498_s30, %s2499_s9  }
  0x25   :  { %2491 = dma.done.wait [#allocation3], 8192  }
  0x26   :  { %2492 = vsyncadd [#allocation3], 4294959104 }
  0x27   :  { %2493 = dma.done.wait [#allocation6], 4096  }
  0x28   :  { %2494 = vsyncadd [#allocation6], 4294963200  ;;  %v3594_v0 = vmov 0.0   ;;  %v76_v1 = vld [vmem:[%s3584_s1 + $0x28] sm:$0xff]  ;;  %v75_v2 = vld [vmem:[%s3584_s1 + $0x20] sm:$0xff]  ;;  %vm207_vm0 = vcmask 130048  }
  0x29   :  { %296 = vmatprep.mubr.f32.mxu0 %v3594_v0  ;;  %409 = vmatprep.mubr.f32.mxu1 %v3594_v0  ;;  %v72_v3 = vld [vmem:[%s3584_s1 + $0x8] sm:$0xff]  ;;  %v71_v4 = vld [vmem:[%s3584_s1] sm:$0xff]  ;;  %v78_v6 = vld [vmem:[%s3584_s1 + $0x38] sm:$0xff] }
  0x2a   :  { %260 = vmatprep.subr.mxu0 %v76_v1  ;;  %v178_v5 = vld [vmem:[%s3583_s0] sm:$0xff]  ;;  %373 = vmatprep.subr.mxu1 %v78_v6  ;;  %v77_v7 = vld [vmem:[%s3584_s1 + $0x30] sm:$0xff]  ;;  %v74_v8 = vld [vmem:[%s3584_s1 + $0x18] sm:$0xff] }
  0x2b   :  { %261 = vmatpush1.msra.mxu0 %v75_v2  ;;  %v73_v9 = vld [vmem:[%s3584_s1 + $0x10] sm:$0xff]  ;;  %374 = vmatpush1.msra.mxu1 %v77_v7  ;;  %v2599_v10 = vld [vmem:[#allocation2 + $0x1e8] sm:$0xff]  ;;  %v2601_v11 = vld [vmem:[#allocation2 + $0x1f8] sm:$0xff] }
  0x2c   :  { %262 = vmatprep.subr.mxu0 %v72_v3  ;;  %375 = vmatprep.subr.mxu1 %v74_v8  ;;  %3689 = vst [vmem:[#allocation12_spill] sm:$0xff] %v2599_v10  ;;  %3690 = vst [vmem:[#allocation13_spill] sm:$0xff] %v2601_v11  ;;  %v2604_v12 = vld [vmem:[#allocation2 + $0x1e0] sm:$0xff]  ;;  %v2607_v13 = vld [vmem:[#allocation2 + $0x1f0] sm:$0xff] }
  0x2d   :  { %263 = vmatpush1.msra.mxu0 %v71_v4  ;;  %376 = vmatpush1.msra.mxu1 %v73_v9  ;;  %v2610_v14 = vld [vmem:[#allocation2 + $0x1c8] sm:$0xff]  ;;  %v2616_v16 = vld [vmem:[#allocation2 + $0x1d8] sm:$0xff]  ;;  %v2620_v17 = vld [vmem:[#allocation2 + $0x1c0] sm:$0xff] }
  0x2e   :  { %2000 = vmatmul.mubr.msk.f32.vlgmr.msra.gmra.mxu0 %vm207_vm0, %v178_v5  ;;  %2008 = vmatmul.mubr.msk.f32.vlgmr.msra.gmra.mxu1 %vm207_vm0, %v178_v5  ;;  %v179_v15 = vld [vmem:[%s3583_s0 + $0x8] sm:$0xff]  ;;  %v2622_v18 = vld [vmem:[#allocation2 + $0x1d0] sm:$0xff]  ;;  %v2628_v20 = vld [vmem:[#allocation2 + $0x1b8] sm:$0xff] }
  0x2f   :  { %302 = vmatprep.mubr.f32.mxu0 %v3594_v0  ;;  %415 = vmatprep.mubr.f32.mxu1 %v3594_v0  ;;  %v2626_v19 = vld [vmem:[#allocation2 + $0x1a8] sm:$0xff]  ;;  %v2632_v21 = vld [vmem:[#allocation2 + $0x1a0] sm:$0xff]  ;;  %v2634_v22 = vld [vmem:[#allocation2 + $0x1b0] sm:$0xff] }
  0x30   :  { %482 = vmatprep.subr.mxu0 %v2599_v10  ;;  %553 = vmatprep.subr.mxu1 %v2601_v11  ;;  %v2638_v23 = vld [vmem:[#allocation2 + $0x188] sm:$0xff]  ;;  %v180_v24 = vld [vmem:[%s3583_s0 + $0x10] sm:$0xff]  ;;  %v2643_v25 = vld [vmem:[#allocation2 + $0x198] sm:$0xff] }
  0x31   :  { %483 = vmatpush1.msra.mxu0 %v2604_v12  ;;  %554 = vmatpush1.msra.mxu1 %v2607_v13  ;;  %v2647_v26 = vld [vmem:[#allocation2 + $0x180] sm:$0xff]  ;;  %v2651_v27 = vld [vmem:[#allocation2 + $0x168] sm:$0xff]  ;;  %v2653_v28 = vld [vmem:[#allocation2 + $0x190] sm:$0xff] }
  0x32   :  { %484 = vmatprep.subr.mxu0 %v2610_v14  ;;  %2001 = vmatmul.mubr.msk.f32.gmra.mxu0 %vm207_vm0, %v179_v15  ;;  %v2657_v29 = vld [vmem:[#allocation2 + $0x160] sm:$0xff]  ;;  %v2661_v30 = vld [vmem:[#allocation2 + $0x178] sm:$0xff]  ;;  %v2665_v31 = vld [vmem:[#allocation2 + $0x148] sm:$0xff] }
  0x33   :  { %485 = vmatpush1.msra.mxu0 %v2620_v17  ;;  %555 = vmatprep.subr.mxu1 %v2616_v16  ;;  %v2667_v32 = vld [vmem:[#allocation2 + $0x170] sm:$0xff]  ;;  %v181_v33 = vld [vmem:[%s3583_s0 + $0x18] sm:$0xff]  ;;  %v2678_v35 = vld [vmem:[#allocation2 + $0x140] sm:$0xff] }
  0x34   :  { %486 = vmatprep.subr.mxu0 %v2626_v19  ;;  %556 = vmatpush1.msra.mxu1 %v2622_v18  ;;  %v2674_v34 = vld [vmem:[#allocation2 + $0x158] sm:$0xff]  ;;  %v2682_v36 = vld [vmem:[#allocation2 + $0x128] sm:$0xff]  ;;  %v2684_v37 = vld [vmem:[#allocation2 + $0x150] sm:$0xff] }
  0x35   :  { %2009 = vmatmul.mubr.msk.f32.gmra.mxu1 %vm207_vm0, %v179_v15  ;;  %487 = vmatpush1.msra.mxu0 %v2632_v21  ;;  %v2688_v38 = vld [vmem:[#allocation2 + $0x120] sm:$0xff]  ;;  %v2692_v39 = vld [vmem:[#allocation2 + $0x138] sm:$0xff]  ;;  %v2696_v40 = vld [vmem:[#allocation2 + $0x108] sm:$0xff] }
  0x36   :  { %557 = vmatprep.subr.mxu1 %v2628_v20  ;;  %308 = vmatprep.mubr.f32.mxu0 %v3594_v0  ;;  %v2698_v41 = vld [vmem:[#allocation2 + $0x130] sm:$0xff]  ;;  %v182_v42 = vld [vmem:[%s3583_s0 + $0x20] sm:$0xff]  ;;  %v2705_v43 = vld [vmem:[#allocation2 + $0x118] sm:$0xff] }
  0x37   :  { %488 = vmatprep.subr.mxu0 %v2638_v23  ;;  %558 = vmatpush1.msra.mxu1 %v2634_v22  ;;  %v2709_v44 = vld [vmem:[#allocation2 + $0x100] sm:$0xff]  ;;  %v2713_v45 = vld [vmem:[#allocation2 + $0xe8] sm:$0xff]  ;;  %v2715_v46 = vld [vmem:[#allocation2 + $0x110] sm:$0xff] }
  0x38   :  { %2002 = vmatmul.mubr.msk.f32.gmra.mxu0 %vm207_vm0, %v180_v24  ;;  %559 = vmatprep.subr.mxu1 %v2643_v25  ;;  %v2719_v47 = vld [vmem:[#allocation2 + $0xe0] sm:$0xff]  ;;  %v2723_v48 = vld [vmem:[#allocation2 + $0xf8] sm:$0xff]  ;;  %v2727_v49 = vld [vmem:[#allocation2 + $0xc8] sm:$0xff] }
  0x39   :  { %489 = vmatpush1.msra.mxu0 %v2647_v26  ;;  %421 = vmatprep.mubr.f32.mxu1 %v3594_v0  ;;  %v2729_v50 = vld [vmem:[#allocation2 + $0xf0] sm:$0xff]  ;;  %v183_v51 = vld [vmem:[%s3583_s0 + $0x28] sm:$0xff]  ;;  %v2736_v52 = vld [vmem:[#allocation2 + $0xd8] sm:$0xff] }
  0x3a   :  { %490 = vmatprep.subr.mxu0 %v2651_v27  ;;  %560 = vmatpush1.msra.mxu1 %v2653_v28  ;;  %v2740_v53 = vld [vmem:[#allocation2 + $0xc0] sm:$0xff]  ;;  %v2744_v54 = vld [vmem:[#allocation2 + $0xa8] sm:$0xff]  ;;  %v2746_v55 = vld [vmem:[#allocation2 + $0xd0] sm:$0xff] }
  0x3b   :  { %2010 = vmatmul.mubr.msk.f32.gmra.mxu1 %vm207_vm0, %v180_v24  ;;  %491 = vmatpush1.msra.mxu0 %v2657_v29  ;;  %v2750_v56 = vld [vmem:[#allocation2 + $0xa0] sm:$0xff]  ;;  %v2754_v57 = vld [vmem:[#allocation2 + $0xb8] sm:$0xff]  ;;  %v2758_v58 = vld [vmem:[#allocation2 + $0x88] sm:$0xff] }
  0x3c   :  { %561 = vmatprep.subr.mxu1 %v2661_v30  ;;  %314 = vmatprep.mubr.f32.mxu0 %v3594_v0  ;;  %3691 = vst [vmem:[#allocation14_spill] sm:$0xff] %v2750_v56  ;;  %3692 = vst [vmem:[#allocation15_spill] sm:$0xff] %v2758_v58  ;;  %v2760_v59 = vld [vmem:[#allocation2 + $0xb0] sm:$0xff]  ;;  %v2767_v61 = vld [vmem:[#allocation2 + $0x98] sm:$0xff] }
  0x3d   :  { %492 = vmatprep.subr.mxu0 %v2665_v31  ;;  %562 = vmatpush1.msra.mxu1 %v2667_v32  ;;  %3693 = vst [vmem:[#allocation16_spill] sm:$0xff] %v2760_v59  ;;  %v184_v60 = vld [vmem:[%s3583_s0 + $0x30] sm:$0xff]  ;;  %3694 = vst [vmem:[#allocation17_spill] sm:$0xff] %v2767_v61  ;;  %v2771_v62 = vld [vmem:[#allocation2 + $0x80] sm:$0xff] }
  0x3e   :  { %2003 = vmatmul.mubr.msk.f32.gmra.mxu0 %vm207_vm0, %v181_v33  ;;  %563 = vmatprep.subr.mxu1 %v2674_v34  ;;  %3695 = vst [vmem:[#allocation18_spill] sm:$0xff] %v2771_v62  ;;  %v2775_v63 = vld [vmem:[#allocation2 + $0x68] sm:$0xff]  ;;  %v2777_v1 = vld [vmem:[#allocation2 + $0x90] sm:$0xff]  ;;  %v2781_v2 = vld [vmem:[#allocation2 + $0x60] sm:$0xff] }
  0x3f   :  { %493 = vmatpush1.msra.mxu0 %v2678_v35  ;;  %427 = vmatprep.mubr.f32.mxu1 %v3594_v0  ;;  %3696 = vst [vmem:[#allocation19_spill] sm:$0xff] %v2775_v63  ;;  %3697 = vst [vmem:[#allocation20_spill] sm:$0xff] %v2777_v1  ;;  %v2785_v3 = vld [vmem:[#allocation2 + $0x78] sm:$0xff]  ;;  %v2789_v4 = vld [vmem:[#allocation2 + $0x48] sm:$0xff] }
  0x40   :  { %494 = vmatprep.subr.mxu0 %v2682_v36  ;;  %564 = vmatpush1.msra.mxu1 %v2684_v37  ;;  %3698 = vst [vmem:[#allocation21_spill] sm:$0xff] %v2781_v2  ;;  %3699 = vst [vmem:[#allocation22_spill] sm:$0xff] %v2785_v3  ;;  %v2791_v5 = vld [vmem:[#allocation2 + $0x70] sm:$0xff]  ;;  %v185_v6 = vld [vmem:[%s3583_s0 + $0x38] sm:$0xff] }
  0x41   :  { %2011 = vmatmul.mubr.msk.f32.gmra.mxu1 %vm207_vm0, %v181_v33  ;;  %495 = vmatpush1.msra.mxu0 %v2688_v38  ;;  %3700 = vst [vmem:[#allocation23_spill] sm:$0xff] %v2789_v4  ;;  %3701 = vst [vmem:[#allocation24_spill] sm:$0xff] %v2791_v5  ;;  %v2798_v7 = vld [vmem:[#allocation2 + $0x58] sm:$0xff]  ;;  %v2802_v8 = vld [vmem:[#allocation2 + $0x40] sm:$0xff] }
  0x42   :  { %565 = vmatprep.subr.mxu1 %v2692_v39  ;;  %320 = vmatprep.mubr.f32.mxu0 %v3594_v0  ;;  %3702 = vst [vmem:[#allocation25_spill] sm:$0xff] %v2798_v7  ;;  %3703 = vst [vmem:[#allocation26_spill] sm:$0xff] %v2802_v8  ;;  %v2806_v9 = vld [vmem:[#allocation2 + $0x28] sm:$0xff]  ;;  %v2808_v15 = vld [vmem:[#allocation2 + $0x50] sm:$0xff] }
  0x43   :  { %496 = vmatprep.subr.mxu0 %v2696_v40  ;;  %566 = vmatpush1.msra.mxu1 %v2698_v41  ;;  %3704 = vst [vmem:[#allocation27_spill] sm:$0xff] %v2806_v9  ;;  %3705 = vst [vmem:[#allocation28_spill] sm:$0xff] %v2808_v15  ;;  %v2812_v24 = vld [vmem:[#allocation2 + $0x20] sm:$0xff]  ;;  %v2816_v33 = vld [vmem:[#allocation2 + $0x38] sm:$0xff] }
  0x44   :  { %2004 = vmatmul.mubr.msk.f32.gmra.mxu0 %vm207_vm0, %v182_v42  ;;  %567 = vmatprep.subr.mxu1 %v2705_v43  ;;  %3706 = vst [vmem:[#allocation29_spill] sm:$0xff] %v2812_v24  ;;  %3707 = vst [vmem:[#allocation30_spill] sm:$0xff] %v2816_v33 }
  0x45   :  { %497 = vmatpush1.msra.mxu0 %v2709_v44  ;;  %433 = vmatprep.mubr.f32.mxu1 %v3594_v0 }
  0x46   :  { %498 = vmatprep.subr.mxu0 %v2713_v45  ;;  %568 = vmatpush1.msra.mxu1 %v2715_v46 }
  0x47   :  { %2012 = vmatmul.mubr.msk.f32.gmra.mxu1 %vm207_vm0, %v182_v42  ;;  %499 = vmatpush1.msra.mxu0 %v2719_v47  ;;  %v2818_v42 = vld [vmem:[#allocation2 + $0x8] sm:$0xff] }
  0x48   :  { %569 = vmatprep.subr.mxu1 %v2723_v48  ;;  %326 = vmatprep.mubr.f32.mxu0 %v3594_v0  ;;  %3708 = vst [vmem:[#allocation31_spill] sm:$0xff] %v2818_v42 }
  0x49   :  { %500 = vmatprep.subr.mxu0 %v2727_v49  ;;  %570 = vmatpush1.msra.mxu1 %v2729_v50 }
  0x4a   :  { %2005 = vmatmul.mubr.msk.f32.gmra.mxu0 %vm207_vm0, %v183_v51  ;;  %571 = vmatprep.subr.mxu1 %v2736_v52 }
  0x4b   :  { %501 = vmatpush1.msra.mxu0 %v2740_v53  ;;  %439 = vmatprep.mubr.f32.mxu1 %v3594_v0 }
  0x4c   :  { %502 = vmatprep.subr.mxu0 %v2744_v54  ;;  %572 = vmatpush1.msra.mxu1 %v2746_v55 }
  0x4d   :  { %2013 = vmatmul.mubr.msk.f32.gmra.mxu1 %vm207_vm0, %v183_v51  ;;  %503 = vmatpush1.msra.mxu0 %v2750_v56  ;;  %v2822_v51 = vld [vmem:[#allocation2 + $0x30] sm:$0xff] }
  0x4e   :  { %573 = vmatprep.subr.mxu1 %v2754_v57  ;;  %332 = vmatprep.mubr.f32.mxu0 %v3594_v0  ;;  %3709 = vst [vmem:[#allocation32_spill] sm:$0xff] %v2822_v51 }
  0x4f   :  { %504 = vmatprep.subr.mxu0 %v2758_v58  ;;  %574 = vmatpush1.msra.mxu1 %v2760_v59 }
  0x50   :  { %2006 = vmatmul.mubr.msk.f32.gmra.mxu0 %vm207_vm0, %v184_v60  ;;  %575 = vmatprep.subr.mxu1 %v2767_v61 }
  0x51   :  { %505 = vmatpush1.msra.mxu0 %v2771_v62  ;;  %445 = vmatprep.mubr.f32.mxu1 %v3594_v0 }
  0x52   :  { %506 = vmatprep.subr.mxu0 %v2775_v63  ;;  %576 = vmatpush1.msra.mxu1 %v2777_v1 }
  0x53   :  { %2014 = vmatmul.mubr.msk.f32.gmra.mxu1 %vm207_vm0, %v184_v60  ;;  %507 = vmatpush1.msra.mxu0 %v2781_v2  ;;  %v2824_v60 = vld [vmem:[#allocation2] sm:$0xff] }
  0x54   :  { %577 = vmatprep.subr.mxu1 %v2785_v3  ;;  %338 = vmatprep.mubr.f32.mxu0 %v3594_v0  ;;  %3710 = vst [vmem:[#allocation33_spill] sm:$0xff] %v2824_v60 }
  0x55   :  { %508 = vmatprep.subr.mxu0 %v2789_v4  ;;  %578 = vmatpush1.msra.mxu1 %v2791_v5 }
  0x56   :  { %2007 = vmatmul.mubr.msk.f32.gmra.mxu0 %vm207_vm0, %v185_v6  ;;  %579 = vmatprep.subr.mxu1 %v2798_v7  ;;  %v2828_v7 = vld [vmem:[#allocation2 + $0x18] sm:$0xff] }
  0x57   :  { %509 = vmatpush1.msra.mxu0 %v2802_v8  ;;  %451 = vmatprep.mubr.f32.mxu1 %v3594_v0  ;;  %3711 = vst [vmem:[#allocation34_spill] sm:$0xff] %v2828_v7  ;;  %v2832_v0 = vld [vmem:[#allocation2 + $0x10] sm:$0xff] }
  0x58   :  { %510 = vmatprep.subr.mxu0 %v2806_v9  ;;  %580 = vmatpush1.msra.mxu1 %v2808_v15  ;;  %3712 = vst [vmem:[#allocation35_spill] sm:$0xff] %v2832_v0  ;;  %v3713_v9 = vmov 0.0  }
  0x59   :  { %2015 = vmatmul.mubr.msk.f32.gmra.mxu1 %vm207_vm0, %v185_v6  ;;  %511 = vmatpush1.msra.mxu0 %v2812_v24  ;;  %v187_v6 = vlaneseq }
  0x5a   :  { %581 = vmatprep.subr.mxu1 %v2816_v33  ;;  %512 = vmatprep.subr.mxu0 %v2818_v42 }
  0x5b   :  { %582 = vmatpush1.msra.mxu1 %v2822_v51  ;;  %513 = vmatpush1.msra.mxu0 %v2824_v60  ;;  %v188_v42 = vshrl.u32 %v187_v6, 7  ;;  %v143_v51 = vld [vmem:[%s3586_s3] sm:$0xf] }
  0x5c   :  { %583 = vmatprep.subr.mxu1 %v2828_v7  ;;  %546 = vmatprep.mubr.f32.mxu0 %v3713_v9 }
  0x5d   :  { %584 = vmatpush1.msra.mxu1 %v2832_v0  ;;  %617 = vmatprep.mubr.f32.mxu1 %v3713_v9  ;;  %v189_v24 = vsub.s32 0, %v188_v42  ;;  %v193_v60 = vsub.s32 1, %v188_v42  ;;  %v197_v5 = vsub.s32 2, %v188_v42 }
  0x5e   :  { %652 = vmatprep.subr.mxu0 %v2599_v10  ;;  %723 = vmatprep.subr.mxu1 %v2601_v11  ;;  %v201_v11 = vsub.s32 3, %v188_v42 }
  0x5f   :  { %v2845_v33 = vrot.slane %v143_v51, %v189_v24  ;;  %v2847_v7 = vrot.slane %v143_v51, %v193_v60  ;;  %v2853_v24 = vrot.slane %v143_v51, %v197_v5 }
  0x60   :  { %v2851_v2 = vrot.slane %v143_v51, %v201_v11 }
  0x61   :  { %3714 = vst [vmem:[#allocation36_spill] sm:$0xff] %v2845_v33  ;;  %3715 = vst [vmem:[#allocation37_spill] sm:$0xff] %v2847_v7 }
  0xee   :  { %v298_v15 = vpop.f32.mrf.mxu0  ;;  %v411_v4 = vpop.f32.mrf.mxu1 }
  0xef   :  { %v299_v0 = vadd.f32 %v298_v15, %v2845_v33  ;;  %v412_v63 = vadd.f32 %v411_v4, %v2853_v24 }
  0xf0   :  { %v300_v9 = vpop.f32.mrf.mxu0  ;;  %v413_v3 = vpop.f32.mrf.mxu1 }
  0xf1   :  { %v2016_v8 = vmul.f32 -1.442695, %v299_v0  ;;  %v301_v10 = vadd.f32 %v300_v9, %v2847_v7  ;;  %v414_v60 = vadd.f32 %v413_v3, %v2851_v2 }
  0xf3   :  { %2187 = vpow2.f32 %v2016_v8  ;;  %v2017_v6 = vmul.f32 -1.442695, %v301_v10  ;;  %v2018_v15 = vmul.f32 -1.442695, %v414_v60  ;;  %v3719_v60 = vld [vmem:[#allocation22_spill] sm:$0xff] }
  0xf5   :  { %2189 = vpow2.f32 %v2017_v6 }
  0xf6   :  { %2191 = vtanh.f32 %v412_v63 }
  0xf7   :  { %2193 = vpow2.f32 %v2018_v15  ;;  %v3720_v15 = vld [vmem:[#allocation21_spill] sm:$0xff] }
 0x100   :  { %v2188_v33 = vpop.eup %2187 }
 0x101   :  { %v461_v0 = vadd.f32 1.0, %v2188_v33  ;;  %v3718_v33 = vld [vmem:[#allocation19_spill] sm:$0xff] }
 0x102   :  { %v2190_v9 = vpop.eup %2189 }
 0x103   :  { %2195 = vrcp.f32 %v461_v0  ;;  %v467_v10 = vadd.f32 1.0, %v2190_v9  ;;  %v2192_v8 = vpop.eup %2191  ;;  %v3721_v0 = vld [vmem:[#allocation24_spill] sm:$0xff]  ;;  %v3722_v9 = vld [vmem:[#allocation23_spill] sm:$0xff] }
 0x104   :  { %v2194_v42 = vpop.eup %2193 }
 0x105   :  { %2197 = vrcp.f32 %v467_v10  ;;  %v474_v7 = vadd.f32 1.0, %v2194_v42  ;;  %v3723_v10 = vld [vmem:[#allocation25_spill] sm:$0xff]  ;;  %v3725_v42 = vld [vmem:[#allocation28_spill] sm:$0xff] }
 0x107   :  { %2199 = vrcp.f32 %v474_v7  ;;  %v3717_v7 = vld [vmem:[#allocation20_spill] sm:$0xff] }
 0x110   :  { %v2196_v11 = vpop.eup %2195 }
 0x111   :  { %v478_v51 = vmul.f32 %v2196_v11, %v2192_v8  ;;  %v3724_v8 = vld [vmem:[#allocation26_spill] sm:$0xff]  ;;  %v3726_v11 = vld [vmem:[#allocation27_spill] sm:$0xff] }
 0x112   :  { %v2198_v6 = vpop.eup %2197 }
 0x113   :  { %v477_v5 = vmul.f32 0.0, %v2198_v6  ;;  %v3727_v6 = vld [vmem:[#allocation30_spill] sm:$0xff] }
 0x114   :  { %v2200_v3 = vpop.eup %2199 }
 0x115   :  { %v2857_v1 = vadd.f32 %v478_v51, %v477_v5  ;;  %v3728_v5 = vld [vmem:[#allocation29_spill] sm:$0xff]  ;;  %v3729_v51 = vld [vmem:[#allocation32_spill] sm:$0xff] }
 0x117   :  { %2201 = vtanh.f32 %v2857_v1 }
 0x124   :  { %v2202_v4 = vpop.eup %2201 }
 0x125   :  { %v2860_v63 = vmul.f32 %v2202_v4, %v2200_v3  ;;  %v3730_v3 = vld [vmem:[#allocation31_spill] sm:$0xff]  ;;  %v3731_v4 = vld [vmem:[#allocation34_spill] sm:$0xff] }
 0x127   :  { %3716 = vst [vmem:[#allocation38_spill] sm:$0xff] %v2860_v63  ;;  %547 = vmatmul.mubr.f32.vlgmr.msra.gmra.mxu0 %v2860_v63  ;;  %618 = vmatmul.mubr.f32.vlgmr.msra.gmra.mxu1 %v2860_v63  ;;  %v3732_v63 = vld [vmem:[#allocation33_spill] sm:$0xff] }
 0x128   :  { %653 = vmatpush1.msra.mxu0 %v2604_v12  ;;  %724 = vmatpush1.msra.mxu1 %v2607_v13 }
 0x129   :  { %654 = vmatprep.subr.mxu0 %v2610_v14  ;;  %725 = vmatprep.subr.mxu1 %v2616_v16 }
 0x12a   :  { %655 = vmatpush1.msra.mxu0 %v2620_v17  ;;  %726 = vmatpush1.msra.mxu1 %v2622_v18 }
 0x12b   :  { %656 = vmatprep.subr.mxu0 %v2626_v19  ;;  %727 = vmatprep.subr.mxu1 %v2628_v20 }
 0x12c   :  { %657 = vmatpush1.msra.mxu0 %v2632_v21  ;;  %728 = vmatpush1.msra.mxu1 %v2634_v22 }
 0x12d   :  { %658 = vmatprep.subr.mxu0 %v2638_v23  ;;  %729 = vmatprep.subr.mxu1 %v2643_v25 }
 0x12e   :  { %659 = vmatpush1.msra.mxu0 %v2647_v26  ;;  %730 = vmatpush1.msra.mxu1 %v2653_v28 }
 0x12f   :  { %660 = vmatprep.subr.mxu0 %v2651_v27  ;;  %731 = vmatprep.subr.mxu1 %v2661_v30 }
 0x130   :  { %661 = vmatpush1.msra.mxu0 %v2657_v29  ;;  %732 = vmatpush1.msra.mxu1 %v2667_v32 }
 0x131   :  { %662 = vmatprep.subr.mxu0 %v2665_v31  ;;  %733 = vmatprep.subr.mxu1 %v2674_v34 }
 0x132   :  { %663 = vmatpush1.msra.mxu0 %v2678_v35  ;;  %734 = vmatpush1.msra.mxu1 %v2684_v37 }
 0x133   :  { %664 = vmatprep.subr.mxu0 %v2682_v36  ;;  %735 = vmatprep.subr.mxu1 %v2692_v39 }
 0x134   :  { %665 = vmatpush1.msra.mxu0 %v2688_v38  ;;  %736 = vmatpush1.msra.mxu1 %v2698_v41 }
 0x135   :  { %666 = vmatprep.subr.mxu0 %v2696_v40  ;;  %737 = vmatprep.subr.mxu1 %v2705_v43 }
 0x136   :  { %667 = vmatpush1.msra.mxu0 %v2709_v44  ;;  %738 = vmatpush1.msra.mxu1 %v2715_v46 }
 0x137   :  { %668 = vmatprep.subr.mxu0 %v2713_v45  ;;  %739 = vmatprep.subr.mxu1 %v2723_v48 }
 0x138   :  { %669 = vmatpush1.msra.mxu0 %v2719_v47  ;;  %740 = vmatpush1.msra.mxu1 %v2729_v50 }
 0x139   :  { %670 = vmatprep.subr.mxu0 %v2727_v49  ;;  %741 = vmatprep.subr.mxu1 %v2736_v52 }
 0x13a   :  { %671 = vmatpush1.msra.mxu0 %v2740_v53  ;;  %742 = vmatpush1.msra.mxu1 %v2746_v55 }
 0x13b   :  { %672 = vmatprep.subr.mxu0 %v2744_v54  ;;  %743 = vmatprep.subr.mxu1 %v2754_v57 }
 0x13c   :  { %673 = vmatpush1.msra.mxu0 %v2750_v56  ;;  %744 = vmatpush1.msra.mxu1 %v2760_v59 }
 0x13d   :  { %674 = vmatprep.subr.mxu0 %v2758_v58  ;;  %745 = vmatprep.subr.mxu1 %v2767_v61 }
 0x13e   :  { %675 = vmatpush1.msra.mxu0 %v2771_v62  ;;  %746 = vmatpush1.msra.mxu1 %v3717_v7 }
 0x13f   :  { %676 = vmatprep.subr.mxu0 %v3718_v33  ;;  %747 = vmatprep.subr.mxu1 %v3719_v60 }
 0x140   :  { %677 = vmatpush1.msra.mxu0 %v3720_v15  ;;  %748 = vmatpush1.msra.mxu1 %v3721_v0 }
 0x141   :  { %678 = vmatprep.subr.mxu0 %v3722_v9  ;;  %749 = vmatprep.subr.mxu1 %v3723_v10  ;;  %v3733_v9 = vmov 0.0   ;;  %v3734_v10 = vld [vmem:[#allocation35_spill] sm:$0xff] }
 0x142   :  { %679 = vmatpush1.msra.mxu0 %v3724_v8  ;;  %750 = vmatpush1.msra.mxu1 %v3725_v42  ;;  %v3735_v42 = vld [vmem:[#allocation12_spill] sm:$0xff] }
 0x143   :  { %680 = vmatprep.subr.mxu0 %v3726_v11  ;;  %751 = vmatprep.subr.mxu1 %v3727_v6  ;;  %v3736_v11 = vld [vmem:[#allocation13_spill] sm:$0xff]  ;;  %v304_v6 = vpop.f32.mrf.mxu0 }
 0x144   :  { %681 = vmatpush1.msra.mxu0 %v3728_v5  ;;  %752 = vmatpush1.msra.mxu1 %v3729_v51  ;;  %v417_v5 = vpop.f32.mrf.mxu1 }
 0x145   :  { %682 = vmatprep.subr.mxu0 %v3730_v3  ;;  %753 = vmatprep.subr.mxu1 %v3731_v4  ;;  %v306_v8 = vpop.f32.mrf.mxu0 }
 0x146   :  { %683 = vmatpush1.msra.mxu0 %v3732_v63  ;;  %716 = vmatprep.mubr.f32.mxu0 %v3733_v9  ;;  %v419_v51 = vpop.f32.mrf.mxu1 }
 0x147   :  { %754 = vmatpush1.msra.mxu1 %v3734_v10  ;;  %787 = vmatprep.mubr.f32.mxu1 %v3733_v9  ;;  %v2930_v0 = vpop.f32.mrf.mxu0 }
 0x148   :  { %822 = vmatprep.subr.mxu0 %v3735_v42  ;;  %893 = vmatprep.subr.mxu1 %v3736_v11  ;;  %3737 = vst [vmem:[#allocation39_spill] sm:$0xff] %v2930_v0  ;;  %v2932_v3 = vpop.f32.mrf.mxu1 }
 0x149   :  { %3738 = vst [vmem:[#allocation40_spill] sm:$0xff] %v2932_v3  ;;  %v2934_v4 = vpop.f32.mrf.mxu0 }
 0x14a   :  { %3739 = vst [vmem:[#allocation41_spill] sm:$0xff] %v2934_v4  ;;  %v2936_v63 = vpop.f32.mrf.mxu1 }
 0x14b   :  { %3740 = vst [vmem:[#allocation42_spill] sm:$0xff] %v2936_v63  ;;  %v2938_v15 = vpop.f32.mrf.mxu0 }
 0x14c   :  { %3741 = vst [vmem:[#allocation43_spill] sm:$0xff] %v2938_v15  ;;  %v2940_v10 = vpop.f32.mrf.mxu1 }
 0x14d   :  { %3742 = vst [vmem:[#allocation44_spill] sm:$0xff] %v2940_v10  ;;  %v2942_v9 = vpop.f32.mrf.mxu0 }
 0x14e   :  { %3743 = vst [vmem:[#allocation45_spill] sm:$0xff] %v2942_v9  ;;  %v2944_v42 = vpop.f32.mrf.mxu1 }
 0x14f   :  { %3744 = vst [vmem:[#allocation46_spill] sm:$0xff] %v2944_v42  ;;  %v2946_v11 = vpop.f32.mrf.mxu0 }
 0x150   :  { %3745 = vst [vmem:[#allocation47_spill] sm:$0xff] %v2946_v11  ;;  %v2948_v60 = vpop.f32.mrf.mxu1 }
 0x151   :  { %3746 = vst [vmem:[#allocation48_spill] sm:$0xff] %v2948_v60  ;;  %v2950_v33 = vpop.f32.mrf.mxu0 }
 0x152   :  { %3747 = vst [vmem:[#allocation49_spill] sm:$0xff] %v2950_v33  ;;  %v2952_v0 = vpop.f32.mrf.mxu1 }
 0x153   :  { %3748 = vst [vmem:[#allocation50_spill] sm:$0xff] %v2952_v0  ;;  %v2954_v3 = vpop.f32.mrf.mxu0 }
 0x154   :  { %3749 = vst [vmem:[#allocation51_spill] sm:$0xff] %v2954_v3  ;;  %v2956_v4 = vpop.f32.mrf.mxu1  ;;  %v3760_v3 = vld [vmem:[#allocation36_spill] sm:$0xff] }
 0x155   :  { %3750 = vst [vmem:[#allocation52_spill] sm:$0xff] %v2956_v4  ;;  %v2958_v63 = vpop.f32.mrf.mxu0  ;;  %v305_v4 = vadd.f32 %v304_v6, %v3760_v3 }
 0x156   :  { %3751 = vst [vmem:[#allocation53_spill] sm:$0xff] %v2958_v63  ;;  %v2960_v15 = vpop.f32.mrf.mxu1  ;;  %v3761_v63 = vld [vmem:[#allocation37_spill] sm:$0xff] }
 0x157   :  { %3752 = vst [vmem:[#allocation54_spill] sm:$0xff] %v2960_v15  ;;  %v2962_v10 = vpop.f32.mrf.mxu0  ;;  %v307_v62 = vadd.f32 %v306_v8, %v3761_v63 }
 0x158   :  { %3753 = vst [vmem:[#allocation55_spill] sm:$0xff] %v2962_v10  ;;  %v2964_v9 = vpop.f32.mrf.mxu1 }
 0x159   :  { %3754 = vst [vmem:[#allocation56_spill] sm:$0xff] %v2964_v9  ;;  %v2966_v42 = vpop.f32.mrf.mxu0 }
 0x15a   :  { %3755 = vst [vmem:[#allocation57_spill] sm:$0xff] %v2966_v42  ;;  %v2968_v11 = vpop.f32.mrf.mxu1 }
 0x15b   :  { %3756 = vst [vmem:[#allocation58_spill] sm:$0xff] %v2968_v11  ;;  %v2970_v60 = vpop.f32.mrf.mxu0 }
 0x15c   :  { %3757 = vst [vmem:[#allocation59_spill] sm:$0xff] %v2970_v60  ;;  %v2972_v33 = vpop.f32.mrf.mxu1 }
 0x15d   :  { %3758 = vst [vmem:[#allocation60_spill] sm:$0xff] %v2972_v33  ;;  %v2974_v0 = vpop.f32.mrf.mxu0  ;;  %v420_v33 = vadd.f32 %v419_v51, %v2851_v2  ;;  %v3768_v51 = vld [vmem:[#allocation18_spill] sm:$0xff] }
 0x15e   :  { %3759 = vst [vmem:[#allocation61_spill] sm:$0xff] %v2974_v0  ;;  %v2978_v15 = vpop.f32.mrf.mxu1  ;;  %v418_v0 = vadd.f32 %v417_v5, %v2853_v24  ;;  %v3767_v5 = vld [vmem:[#allocation17_spill] sm:$0xff] }
 0x15f   :  { %3762 = vst [vmem:[#allocation62_spill] sm:$0xff] %v2978_v15  ;;  %v3783_v15 = vld [vmem:[#allocation34_spill] sm:$0xff] }
 0x1e7   :  { %v548_v7 = vpop.f32.mrf.mxu0  ;;  %v619_v42 = vpop.f32.mrf.mxu1 }
 0x1e8   :  { %v624_v10 = vadd.f32 %v548_v7, %v305_v4  ;;  %v626_v56 = vadd.f32 %v619_v42, %v418_v0  ;;  %v3770_v4 = vld [vmem:[#allocation19_spill] sm:$0xff] }
 0x1e9   :  { %v550_v61 = vpop.f32.mrf.mxu0  ;;  %v621_v60 = vpop.f32.mrf.mxu1 }
 0x1ea   :  { %v2019_v9 = vmul.f32 -1.442695, %v624_v10  ;;  %v625_v58 = vadd.f32 %v550_v61, %v307_v62  ;;  %v627_v59 = vadd.f32 %v621_v60, %v420_v33 }
 0x1ec   :  { %2203 = vpow2.f32 %v2019_v9  ;;  %v2020_v11 = vmul.f32 -1.442695, %v625_v58  ;;  %v2021_v6 = vmul.f32 -1.442695, %v627_v59 }
 0x1ee   :  { %2205 = vpow2.f32 %v2020_v11 }
 0x1ef   :  { %2207 = vpow2.f32 %v2021_v6  ;;  %v3771_v6 = vld [vmem:[#allocation22_spill] sm:$0xff] }
 0x1f9   :  { %v2204_v3 = vpop.eup %2203 }
 0x1fa   :  { %v631_v8 = vadd.f32 1.0, %v2204_v3  ;;  %v3769_v3 = vld [vmem:[#allocation20_spill] sm:$0xff] }
 0x1fb   :  { %v2206_v63 = vpop.eup %2205 }
 0x1fc   :  { %2209 = vrcp.f32 %v631_v8  ;;  %v637_v7 = vadd.f32 1.0, %v2206_v63  ;;  %v2208_v61 = vpop.eup %2207  ;;  %v3766_v63 = vld [vmem:[#allocation15_spill] sm:$0xff]  ;;  %v3772_v8 = vld [vmem:[#allocation21_spill] sm:$0xff] }
 0x1fd   :  { %2211 = vtanh.f32 %v626_v56  ;;  %v644_v10 = vadd.f32 1.0, %v2208_v61  ;;  %v3764_v56 = vld [vmem:[#allocation14_spill] sm:$0xff]  ;;  %v3774_v61 = vld [vmem:[#allocation23_spill] sm:$0xff] }
 0x1fe   :  { %2213 = vrcp.f32 %v637_v7  ;;  %v3773_v7 = vld [vmem:[#allocation24_spill] sm:$0xff] }
 0x1ff   :  { %2215 = vrcp.f32 %v644_v10  ;;  %v3778_v10 = vld [vmem:[#allocation27_spill] sm:$0xff] }
 0x209   :  { %v2210_v62 = vpop.eup %2209 }
 0x20a   :  { %v2212_v58 = vpop.eup %2211 }
 0x20b   :  { %v2214_v9 = vpop.eup %2213  ;;  %v648_v11 = vmul.f32 %v2212_v58, %v2210_v62  ;;  %v3775_v62 = vld [vmem:[#allocation25_spill] sm:$0xff]  ;;  %v3776_v58 = vld [vmem:[#allocation26_spill] sm:$0xff] }
 0x20c   :  { %v647_v33 = vmul.f32 %v2214_v9, %v2857_v1  ;;  %v2216_v59 = vpop.eup %2215  ;;  %v3765_v1 = vld [vmem:[#allocation16_spill] sm:$0xff] }
 0x20d   :  { %v3777_v9 = vld [vmem:[#allocation28_spill] sm:$0xff] }
 0x20e   :  { %v2983_v60 = vadd.f32 %v648_v11, %v647_v33  ;;  %v3779_v11 = vld [vmem:[#allocation30_spill] sm:$0xff]  ;;  %v3780_v33 = vld [vmem:[#allocation29_spill] sm:$0xff] }
 0x210   :  { %2217 = vtanh.f32 %v2983_v60 }
 0x21d   :  { %v2218_v0 = vpop.eup %2217 }
 0x21e   :  { %v2986_v42 = vmul.f32 %v2218_v0, %v2216_v59  ;;  %v3781_v59 = vld [vmem:[#allocation32_spill] sm:$0xff]  ;;  %v3782_v0 = vld [vmem:[#allocation31_spill] sm:$0xff] }
 0x220   :  { %3763 = vst [vmem:[#allocation63_spill] sm:$0xff] %v2986_v42  ;;  %717 = vmatmul.mubr.f32.vlgmr.msra.gmra.mxu0 %v2986_v42  ;;  %788 = vmatmul.mubr.f32.vlgmr.msra.gmra.mxu1 %v2986_v42  ;;  %v3784_v42 = vld [vmem:[#allocation33_spill] sm:$0xff] }
 0x221   :  { %823 = vmatpush1.msra.mxu0 %v2604_v12  ;;  %894 = vmatpush1.msra.mxu1 %v2607_v13 }
 0x222   :  { %824 = vmatprep.subr.mxu0 %v2610_v14  ;;  %895 = vmatprep.subr.mxu1 %v2616_v16 }
 0x223   :  { %825 = vmatpush1.msra.mxu0 %v2620_v17  ;;  %896 = vmatpush1.msra.mxu1 %v2622_v18 }
 0x224   :  { %826 = vmatprep.subr.mxu0 %v2626_v19  ;;  %897 = vmatprep.subr.mxu1 %v2628_v20 }
 0x225   :  { %827 = vmatpush1.msra.mxu0 %v2632_v21  ;;  %898 = vmatpush1.msra.mxu1 %v2634_v22 }
 0x226   :  { %828 = vmatprep.subr.mxu0 %v2638_v23  ;;  %899 = vmatprep.subr.mxu1 %v2643_v25 }
 0x227   :  { %829 = vmatpush1.msra.mxu0 %v2647_v26  ;;  %900 = vmatpush1.msra.mxu1 %v2653_v28 }
 0x228   :  { %830 = vmatprep.subr.mxu0 %v2651_v27  ;;  %901 = vmatprep.subr.mxu1 %v2661_v30 }
 0x229   :  { %831 = vmatpush1.msra.mxu0 %v2657_v29  ;;  %902 = vmatpush1.msra.mxu1 %v2667_v32 }
 0x22a   :  { %832 = vmatprep.subr.mxu0 %v2665_v31  ;;  %903 = vmatprep.subr.mxu1 %v2674_v34 }
 0x22b   :  { %833 = vmatpush1.msra.mxu0 %v2678_v35  ;;  %904 = vmatpush1.msra.mxu1 %v2684_v37 }
 0x22c   :  { %834 = vmatprep.subr.mxu0 %v2682_v36  ;;  %905 = vmatprep.subr.mxu1 %v2692_v39 }
 0x22d   :  { %835 = vmatpush1.msra.mxu0 %v2688_v38  ;;  %906 = vmatpush1.msra.mxu1 %v2698_v41 }
 0x22e   :  { %836 = vmatprep.subr.mxu0 %v2696_v40  ;;  %907 = vmatprep.subr.mxu1 %v2705_v43 }
 0x22f   :  { %837 = vmatpush1.msra.mxu0 %v2709_v44  ;;  %908 = vmatpush1.msra.mxu1 %v2715_v46 }
 0x230   :  { %838 = vmatprep.subr.mxu0 %v2713_v45  ;;  %909 = vmatprep.subr.mxu1 %v2723_v48 }
 0x231   :  { %839 = vmatpush1.msra.mxu0 %v2719_v47  ;;  %910 = vmatpush1.msra.mxu1 %v2729_v50 }
 0x232   :  { %840 = vmatprep.subr.mxu0 %v2727_v49  ;;  %911 = vmatprep.subr.mxu1 %v2736_v52 }
 0x233   :  { %841 = vmatpush1.msra.mxu0 %v2740_v53  ;;  %912 = vmatpush1.msra.mxu1 %v2746_v55 }
 0x234   :  { %842 = vmatprep.subr.mxu0 %v2744_v54  ;;  %913 = vmatprep.subr.mxu1 %v2754_v57 }
 0x235   :  { %843 = vmatpush1.msra.mxu0 %v3764_v56  ;;  %914 = vmatpush1.msra.mxu1 %v3765_v1 }
 0x236   :  { %844 = vmatprep.subr.mxu0 %v3766_v63  ;;  %915 = vmatprep.subr.mxu1 %v3767_v5  ;;  %v3794_v5 = vld [vmem:[#allocation40_spill] sm:$0xff] }
 0x237   :  { %845 = vmatpush1.msra.mxu0 %v3768_v51  ;;  %916 = vmatpush1.msra.mxu1 %v3769_v3 }
 0x238   :  { %846 = vmatprep.subr.mxu0 %v3770_v4  ;;  %917 = vmatprep.subr.mxu1 %v3771_v6 }
 0x239   :  { %847 = vmatpush1.msra.mxu0 %v3772_v8  ;;  %918 = vmatpush1.msra.mxu1 %v3773_v7  ;;  %v3791_v7 = vld [vmem:[#allocation37_spill] sm:$0xff] }
 0x23a   :  { %848 = vmatprep.subr.mxu0 %v3774_v61  ;;  %919 = vmatprep.subr.mxu1 %v3775_v62  ;;  %v3785_v61 = vmov 0.0   ;;  %v3786_v62 = vld [vmem:[#allocation35_spill] sm:$0xff] }
 0x23b   :  { %849 = vmatpush1.msra.mxu0 %v3776_v58  ;;  %920 = vmatpush1.msra.mxu1 %v3777_v9  ;;  %v3787_v9 = vld [vmem:[#allocation12_spill] sm:$0xff] }
 0x23c   :  { %850 = vmatprep.subr.mxu0 %v3778_v10  ;;  %921 = vmatprep.subr.mxu1 %v3779_v11  ;;  %v3788_v10 = vld [vmem:[#allocation13_spill] sm:$0xff]  ;;  %v3789_v11 = vld [vmem:[#allocation36_spill] sm:$0xff] }
 0x23d   :  { %851 = vmatpush1.msra.mxu0 %v3780_v33  ;;  %922 = vmatpush1.msra.mxu1 %v3781_v59  ;;  %v3790_v33 = vld [vmem:[#allocation39_spill] sm:$0xff] }
 0x23e   :  { %852 = vmatprep.subr.mxu0 %v3782_v0  ;;  %923 = vmatprep.subr.mxu1 %v3783_v15  ;;  %v311_v58 = vadd.f32 %v3790_v33, %v3789_v11  ;;  %v3792_v0 = vld [vmem:[#allocation41_spill] sm:$0xff]  ;;  %v424_v33 = vadd.f32 %v3794_v5, %v2853_v24 }
 0x23f   :  { %853 = vmatpush1.msra.mxu0 %v3784_v42  ;;  %886 = vmatprep.mubr.f32.mxu0 %v3785_v61  ;;  %v313_v8 = vadd.f32 %v3792_v0, %v3791_v7 }
 0x240   :  { %924 = vmatpush1.msra.mxu1 %v3786_v62  ;;  %957 = vmatprep.mubr.f32.mxu1 %v3785_v61 }
 0x241   :  { %992 = vmatprep.subr.mxu0 %v3787_v9  ;;  %1063 = vmatprep.subr.mxu1 %v3788_v10  ;;  %v3793_v9 = vld [vmem:[#allocation42_spill] sm:$0xff] }
 0x242   :  { %v426_v51 = vadd.f32 %v3793_v9, %v2851_v2 }
 0x2e0   :  { %v718_v59 = vpop.f32.mrf.mxu0  ;;  %v789_v3 = vpop.f32.mrf.mxu1 }
 0x2e1   :  { %v794_v15 = vadd.f32 %v718_v59, %v311_v58  ;;  %v796_v11 = vadd.f32 %v789_v3, %v424_v33 }
 0x2e2   :  { %v720_v6 = vpop.f32.mrf.mxu0  ;;  %v791_v61 = vpop.f32.mrf.mxu1 }
 0x2e3   :  { %v2022_v42 = vmul.f32 -1.442695, %v794_v15  ;;  %v795_v4 = vadd.f32 %v720_v6, %v313_v8  ;;  %v797_v10 = vadd.f32 %v791_v61, %v426_v51 }
 0x2e5   :  { %2219 = vpow2.f32 %v2022_v42  ;;  %v2023_v62 = vmul.f32 -1.442695, %v795_v4  ;;  %v2024_v63 = vmul.f32 -1.442695, %v797_v10 }
 0x2e7   :  { %2221 = vpow2.f32 %v2023_v62 }
 0x2e8   :  { %2223 = vtanh.f32 %v796_v11 }
 0x2e9   :  { %2225 = vpow2.f32 %v2024_v63 }
 0x2f2   :  { %v2220_v1 = vpop.eup %2219 }
 0x2f3   :  { %v801_v0 = vadd.f32 1.0, %v2220_v1 }
 0x2f4   :  { %v2222_v58 = vpop.eup %2221 }
 0x2f5   :  { %2227 = vrcp.f32 %v801_v0  ;;  %v807_v15 = vadd.f32 1.0, %v2222_v58  ;;  %v2224_v42 = vpop.eup %2223  ;;  %v3821_v58 = vld [vmem:[#allocation46_spill] sm:$0xff] }
 0x2f6   :  { %v2226_v4 = vpop.eup %2225 }
 0x2f7   :  { %2229 = vrcp.f32 %v807_v15  ;;  %v814_v59 = vadd.f32 1.0, %v2226_v4  ;;  %v432_v15 = vadd.f32 %v3821_v58, %v2851_v2  ;;  %v3822_v4 = vld [vmem:[#allocation44_spill] sm:$0xff]  ;;  %v3161_v58 = vld [vmem:[#allocation2 + $0x1f0] sm:$0xff] }
 0x2f9   :  { %2231 = vrcp.f32 %v814_v59 }
 0x302   :  { %v2228_v6 = vpop.eup %2227 }
 0x303   :  { %v818_v8 = vmul.f32 %v2228_v6, %v2224_v42  ;;  %v430_v6 = vadd.f32 %v3822_v4, %v2853_v24  ;;  %v3173_v4 = vld [vmem:[#allocation2 + $0x1d0] sm:$0xff] }
 0x304   :  { %v2230_v62 = vpop.eup %2229 }
 0x305   :  { %v817_v51 = vmul.f32 %v2230_v62, %v2983_v60 }
 0x306   :  { %v2232_v1 = vpop.eup %2231 }
 0x307   :  { %v3065_v61 = vadd.f32 %v818_v8, %v817_v51 }
 0x309   :  { %2233 = vtanh.f32 %v3065_v61 }
 0x316   :  { %v2234_v5 = vpop.eup %2233 }
 0x317   :  { %v3068_v3 = vmul.f32 %v2234_v5, %v2232_v1 }
 0x319   :  { %3795 = vst [vmem:[#allocation14_spill] sm:$0xff] %v3068_v3  ;;  %887 = vmatmul.mubr.f32.vlgmr.msra.gmra.mxu0 %v3068_v3  ;;  %958 = vmatmul.mubr.f32.vlgmr.msra.gmra.mxu1 %v3068_v3  ;;  %v3227_v3 = vld [vmem:[#allocation2 + $0x138] sm:$0xff] }
 0x31a   :  { %993 = vmatpush1.msra.mxu0 %v2604_v12  ;;  %1064 = vmatpush1.msra.mxu1 %v2607_v13  ;;  %v3796_v12 = vld [vmem:[#allocation16_spill] sm:$0xff]  ;;  %v3797_v13 = vld [vmem:[#allocation15_spill] sm:$0xff]  ;;  %3829 = vst [vmem:[#allocation40_spill] sm:$0xff] %v3227_v3 }
 0x31b   :  { %994 = vmatprep.subr.mxu0 %v2610_v14  ;;  %1065 = vmatprep.subr.mxu1 %v2616_v16  ;;  %v3798_v14 = vld [vmem:[#allocation17_spill] sm:$0xff]  ;;  %v3799_v16 = vld [vmem:[#allocation18_spill] sm:$0xff] }
 0x31c   :  { %995 = vmatpush1.msra.mxu0 %v2620_v17  ;;  %1066 = vmatpush1.msra.mxu1 %v2622_v18  ;;  %v3800_v17 = vld [vmem:[#allocation20_spill] sm:$0xff]  ;;  %v3801_v18 = vld [vmem:[#allocation19_spill] sm:$0xff] }
 0x31d   :  { %996 = vmatprep.subr.mxu0 %v2626_v19  ;;  %1067 = vmatprep.subr.mxu1 %v2628_v20  ;;  %v3802_v19 = vld [vmem:[#allocation22_spill] sm:$0xff]  ;;  %v3803_v20 = vld [vmem:[#allocation21_spill] sm:$0xff] }
 0x31e   :  { %997 = vmatpush1.msra.mxu0 %v2632_v21  ;;  %1068 = vmatpush1.msra.mxu1 %v2634_v22  ;;  %v3804_v21 = vld [vmem:[#allocation24_spill] sm:$0xff]  ;;  %v3805_v22 = vld [vmem:[#allocation23_spill] sm:$0xff] }
 0x31f   :  { %998 = vmatprep.subr.mxu0 %v2638_v23  ;;  %1069 = vmatprep.subr.mxu1 %v2643_v25  ;;  %v3806_v23 = vld [vmem:[#allocation25_spill] sm:$0xff]  ;;  %v3807_v25 = vld [vmem:[#allocation26_spill] sm:$0xff] }
 0x320   :  { %999 = vmatpush1.msra.mxu0 %v2647_v26  ;;  %1070 = vmatpush1.msra.mxu1 %v2653_v28  ;;  %v3808_v26 = vld [vmem:[#allocation28_spill] sm:$0xff]  ;;  %v3810_v28 = vld [vmem:[#allocation30_spill] sm:$0xff] }
 0x321   :  { %1000 = vmatprep.subr.mxu0 %v2651_v27  ;;  %1071 = vmatprep.subr.mxu1 %v2661_v30  ;;  %v3809_v27 = vld [vmem:[#allocation27_spill] sm:$0xff]  ;;  %v3812_v30 = vld [vmem:[#allocation32_spill] sm:$0xff] }
 0x322   :  { %1001 = vmatpush1.msra.mxu0 %v2657_v29  ;;  %1072 = vmatpush1.msra.mxu1 %v2667_v32  ;;  %v3811_v29 = vld [vmem:[#allocation29_spill] sm:$0xff]  ;;  %v3814_v32 = vld [vmem:[#allocation34_spill] sm:$0xff] }
 0x323   :  { %1002 = vmatprep.subr.mxu0 %v2665_v31  ;;  %1073 = vmatprep.subr.mxu1 %v2674_v34  ;;  %v3813_v31 = vld [vmem:[#allocation31_spill] sm:$0xff]  ;;  %v3815_v34 = vld [vmem:[#allocation33_spill] sm:$0xff] }
 0x324   :  { %1003 = vmatpush1.msra.mxu0 %v2678_v35  ;;  %1074 = vmatpush1.msra.mxu1 %v2684_v37  ;;  %v3816_v35 = vmov 0.0   ;;  %v3136_v37 = vld [vmem:[#allocation2 + $0x1e8] sm:$0xff] }
 0x325   :  { %1004 = vmatprep.subr.mxu0 %v2682_v36  ;;  %1075 = vmatprep.subr.mxu1 %v2692_v39  ;;  %v3817_v36 = vld [vmem:[#allocation35_spill] sm:$0xff]  ;;  %v3818_v39 = vld [vmem:[#allocation36_spill] sm:$0xff] }
 0x326   :  { %1005 = vmatpush1.msra.mxu0 %v2688_v38  ;;  %1076 = vmatpush1.msra.mxu1 %v2698_v41  ;;  %v3139_v38 = vld [vmem:[#allocation2 + $0x1f8] sm:$0xff] }
 0x327   :  { %1006 = vmatprep.subr.mxu0 %v2696_v40  ;;  %1077 = vmatprep.subr.mxu1 %v2705_v43  ;;  %v3819_v40 = vld [vmem:[#allocation43_spill] sm:$0xff] }
 0x328   :  { %1007 = vmatpush1.msra.mxu0 %v2709_v44  ;;  %1078 = vmatpush1.msra.mxu1 %v2715_v46  ;;  %v317_v41 = vadd.f32 %v3819_v40, %v3818_v39  ;;  %v3820_v44 = vld [vmem:[#allocation45_spill] sm:$0xff] }
 0x329   :  { %1008 = vmatprep.subr.mxu0 %v2713_v45  ;;  %1079 = vmatprep.subr.mxu1 %v2723_v48  ;;  %v319_v45 = vadd.f32 %v3820_v44, %v3791_v7 }
 0x32a   :  { %1009 = vmatpush1.msra.mxu0 %v2719_v47  ;;  %1080 = vmatpush1.msra.mxu1 %v2729_v50 }
 0x32b   :  { %1010 = vmatprep.subr.mxu0 %v2727_v49  ;;  %1081 = vmatprep.subr.mxu1 %v2736_v52 }
 0x32c   :  { %1011 = vmatpush1.msra.mxu0 %v2740_v53  ;;  %1082 = vmatpush1.msra.mxu1 %v2746_v55 }
 0x32d   :  { %1012 = vmatprep.subr.mxu0 %v2744_v54  ;;  %1083 = vmatprep.subr.mxu1 %v2754_v57 }
 0x32e   :  { %1013 = vmatpush1.msra.mxu0 %v3764_v56  ;;  %1084 = vmatpush1.msra.mxu1 %v3796_v12 }
 0x32f   :  { %1014 = vmatprep.subr.mxu0 %v3797_v13  ;;  %1085 = vmatprep.subr.mxu1 %v3798_v14 }
 0x330   :  { %1015 = vmatpush1.msra.mxu0 %v3799_v16  ;;  %1086 = vmatpush1.msra.mxu1 %v3800_v17 }
 0x331   :  { %1016 = vmatprep.subr.mxu0 %v3801_v18  ;;  %1087 = vmatprep.subr.mxu1 %v3802_v19 }
 0x332   :  { %1017 = vmatpush1.msra.mxu0 %v3803_v20  ;;  %1088 = vmatpush1.msra.mxu1 %v3804_v21 }
 0x333   :  { %1018 = vmatprep.subr.mxu0 %v3805_v22  ;;  %1089 = vmatprep.subr.mxu1 %v3806_v23 }
 0x334   :  { %1019 = vmatpush1.msra.mxu0 %v3807_v25  ;;  %1090 = vmatpush1.msra.mxu1 %v3808_v26 }
 0x335   :  { %1020 = vmatprep.subr.mxu0 %v3809_v27  ;;  %1091 = vmatprep.subr.mxu1 %v3810_v28 }
 0x336   :  { %1021 = vmatpush1.msra.mxu0 %v3811_v29  ;;  %1092 = vmatpush1.msra.mxu1 %v3812_v30 }
 0x337   :  { %1022 = vmatprep.subr.mxu0 %v3813_v31  ;;  %1093 = vmatprep.subr.mxu1 %v3814_v32 }
 0x338   :  { %1023 = vmatpush1.msra.mxu0 %v3815_v34  ;;  %1056 = vmatprep.mubr.f32.mxu0 %v3816_v35 }
 0x339   :  { %1094 = vmatpush1.msra.mxu1 %v3817_v36  ;;  %1127 = vmatprep.mubr.f32.mxu1 %v3816_v35 }
 0x33a   :  { %1162 = vmatprep.subr.mxu0 %v3136_v37  ;;  %1233 = vmatprep.subr.mxu1 %v3139_v38 }
 0x3d9   :  { %v888_v43 = vpop.f32.mrf.mxu0  ;;  %v959_v10 = vpop.f32.mrf.mxu1 }
 0x3da   :  { %v964_v60 = vadd.f32 %v888_v43, %v317_v41  ;;  %v966_v8 = vadd.f32 %v959_v10, %v430_v6  ;;  %v3176_v6 = vld [vmem:[#allocation2 + $0x1a8] sm:$0xff] }
 0x3db   :  { %v890_v63 = vpop.f32.mrf.mxu0  ;;  %v961_v0 = vpop.f32.mrf.mxu1 }
 0x3dc   :  { %v2025_v11 = vmul.f32 -1.442695, %v964_v60  ;;  %v965_v9 = vadd.f32 %v890_v63, %v319_v45  ;;  %v967_v42 = vadd.f32 %v961_v0, %v432_v15  ;;  %v3158_v0 = vld [vmem:[#allocation2 + $0x1e0] sm:$0xff]  ;;  %v3167_v15 = vld [vmem:[#allocation2 + $0x1d8] sm:$0xff] }
 0x3de   :  { %2235 = vpow2.f32 %v2025_v11  ;;  %v2026_v33 = vmul.f32 -1.442695, %v965_v9  ;;  %v2027_v62 = vmul.f32 -1.442695, %v967_v42  ;;  %v3170_v42 = vld [vmem:[#allocation2 + $0x1c0] sm:$0xff] }
 0x3e0   :  { %2237 = vpow2.f32 %v2026_v33 }
 0x3e1   :  { %2239 = vtanh.f32 %v966_v8  ;;  %v3179_v8 = vld [vmem:[#allocation2 + $0x1b8] sm:$0xff] }
 0x3e2   :  { %2241 = vpow2.f32 %v2027_v62  ;;  %v3182_v62 = vld [vmem:[#allocation2 + $0x1a0] sm:$0xff] }
 0x3eb   :  { %v2236_v59 = vpop.eup %2235 }
 0x3ec   :  { %v971_v51 = vadd.f32 1.0, %v2236_v59  ;;  %v3185_v59 = vld [vmem:[#allocation2 + $0x1b0] sm:$0xff] }
 0x3ed   :  { %v2238_v1 = vpop.eup %2237 }
 0x3ee   :  { %2243 = vrcp.f32 %v971_v51  ;;  %v977_v5 = vadd.f32 1.0, %v2238_v1  ;;  %v2240_v40 = vpop.eup %2239  ;;  %v3188_v51 = vld [vmem:[#allocation2 + $0x188] sm:$0xff]  ;;  %v3191_v1 = vld [vmem:[#allocation2 + $0x198] sm:$0xff] }
 0x3ef   :  { %v2242_v41 = vpop.eup %2241 }
 0x3f0   :  { %2245 = vrcp.f32 %v977_v5  ;;  %v984_v60 = vadd.f32 1.0, %v2242_v41  ;;  %v3194_v5 = vld [vmem:[#allocation2 + $0x180] sm:$0xff]  ;;  %v3200_v41 = vld [vmem:[#allocation2 + $0x168] sm:$0xff] }
 0x3f2   :  { %2247 = vrcp.f32 %v984_v60  ;;  %v3212_v60 = vld [vmem:[#allocation2 + $0x148] sm:$0xff] }
 0x3f3   :  { %3824 = vst [vmem:[#allocation13_spill] sm:$0xff] %v3212_v60 }
 0x3fb   :  { %v2244_v43 = vpop.eup %2243 }
 0x3fc   :  { %v988_v44 = vmul.f32 %v2244_v43, %v2240_v40  ;;  %v3197_v40 = vld [vmem:[#allocation2 + $0x190] sm:$0xff]  ;;  %v3203_v43 = vld [vmem:[#allocation2 + $0x178] sm:$0xff] }
 0x3fd   :  { %v2246_v45 = vpop.eup %2245 }
 0x3fe   :  { %v987_v63 = vmul.f32 %v2246_v45, %v3065_v61  ;;  %v3164_v61 = vld [vmem:[#allocation2 + $0x1c8] sm:$0xff]  ;;  %v3209_v45 = vld [vmem:[#allocation2 + $0x170] sm:$0xff] }
 0x3ff   :  { %v2248_v9 = vpop.eup %2247 }
 0x400   :  { %v3151_v11 = vadd.f32 %v988_v44, %v987_v63  ;;  %v3206_v44 = vld [vmem:[#allocation2 + $0x160] sm:$0xff]  ;;  %v3215_v63 = vld [vmem:[#allocation2 + $0x158] sm:$0xff] }
 0x401   :  { %3825 = vst [vmem:[#allocation39_spill] sm:$0xff] %v3215_v63 }
 0x402   :  { %2249 = vtanh.f32 %v3151_v11 }
 0x40f   :  { %v2250_v10 = vpop.eup %2249 }
 0x410   :  { %v3154_v33 = vmul.f32 %v2250_v10, %v2248_v9  ;;  %v3218_v9 = vld [vmem:[#allocation2 + $0x140] sm:$0xff]  ;;  %v3221_v10 = vld [vmem:[#allocation2 + $0x150] sm:$0xff] }
 0x411   :  { %3826 = vst [vmem:[#allocation37_spill] sm:$0xff] %v3218_v9  ;;  %3827 = vst [vmem:[#allocation41_spill] sm:$0xff] %v3221_v10 }
 0x412   :  { %3823 = vst [vmem:[#allocation12_spill] sm:$0xff] %v3154_v33  ;;  %1057 = vmatmul.mubr.f32.vlgmr.msra.gmra.mxu0 %v3154_v33  ;;  %1128 = vmatmul.mubr.f32.vlgmr.msra.gmra.mxu1 %v3154_v33  ;;  %v3224_v33 = vld [vmem:[#allocation2 + $0x128] sm:$0xff] }
 0x413   :  { %1163 = vmatpush1.msra.mxu0 %v3158_v0  ;;  %1234 = vmatpush1.msra.mxu1 %v3161_v58  ;;  %3828 = vst [vmem:[#allocation42_spill] sm:$0xff] %v3224_v33 }
 0x414   :  { %1164 = vmatprep.subr.mxu0 %v3164_v61  ;;  %1235 = vmatprep.subr.mxu1 %v3167_v15 }
 0x415   :  { %1165 = vmatpush1.msra.mxu0 %v3170_v42  ;;  %1236 = vmatpush1.msra.mxu1 %v3173_v4 }
 0x416   :  { %1166 = vmatprep.subr.mxu0 %v3176_v6  ;;  %1237 = vmatprep.subr.mxu1 %v3179_v8 }
 0x417   :  { %1167 = vmatpush1.msra.mxu0 %v3182_v62  ;;  %1238 = vmatpush1.msra.mxu1 %v3185_v59 }
 0x418   :  { %1168 = vmatprep.subr.mxu0 %v3188_v51  ;;  %1239 = vmatprep.subr.mxu1 %v3191_v1 }
 0x419   :  { %1169 = vmatpush1.msra.mxu0 %v3194_v5  ;;  %1240 = vmatpush1.msra.mxu1 %v3197_v40 }
 0x41a   :  { %1170 = vmatprep.subr.mxu0 %v3200_v41  ;;  %1241 = vmatprep.subr.mxu1 %v3203_v43 }
 0x41b   :  { %1171 = vmatpush1.msra.mxu0 %v3206_v44  ;;  %1242 = vmatpush1.msra.mxu1 %v3209_v45 }
 0x41c   :  { %1172 = vmatprep.subr.mxu0 %v3212_v60  ;;  %1243 = vmatprep.subr.mxu1 %v3215_v63  ;;  %v3230_v60 = vld [vmem:[#allocation2 + $0x120] sm:$0xff]  ;;  %v3233_v63 = vld [vmem:[#allocation2 + $0x130] sm:$0xff] }
 0x41d   :  { %1173 = vmatpush1.msra.mxu0 %v3218_v9  ;;  %1244 = vmatpush1.msra.mxu1 %v3221_v10  ;;  %v3236_v9 = vld [vmem:[#allocation2 + $0x108] sm:$0xff]  ;;  %v3239_v10 = vld [vmem:[#allocation2 + $0x118] sm:$0xff] }
 0x41e   :  { %1174 = vmatprep.subr.mxu0 %v3224_v33  ;;  %1245 = vmatprep.subr.mxu1 %v3227_v3  ;;  %v3242_v33 = vld [vmem:[#allocation2 + $0x100] sm:$0xff]  ;;  %v3246_v3 = vld [vmem:[#allocation2 + $0xe8] sm:$0xff] }
 0x41f   :  { %1175 = vmatpush1.msra.mxu0 %v3230_v60  ;;  %1246 = vmatpush1.msra.mxu1 %v3233_v63 }
 0x420   :  { %1176 = vmatprep.subr.mxu0 %v3236_v9  ;;  %1247 = vmatprep.subr.mxu1 %v3239_v10 }
 0x421   :  { %1177 = vmatpush1.msra.mxu0 %v3242_v33  ;;  %1248 = vmatpush1.msra.mxu1 %v2715_v46  ;;  %v3830_v46 = vld [vmem:[#allocation47_spill] sm:$0xff] }
 0x422   :  { %1178 = vmatprep.subr.mxu0 %v3246_v3  ;;  %1249 = vmatprep.subr.mxu1 %v2723_v48 }
 0x423   :  { %1179 = vmatpush1.msra.mxu0 %v2719_v47  ;;  %1250 = vmatpush1.msra.mxu1 %v2729_v50  ;;  %v323_v47 = vadd.f32 %v3830_v46, %v3818_v39 }
 0x424   :  { %1180 = vmatprep.subr.mxu0 %v2727_v49  ;;  %1251 = vmatprep.subr.mxu1 %v2736_v52  ;;  %v3831_v49 = vld [vmem:[#allocation49_spill] sm:$0xff] }
 0x425   :  { %1181 = vmatpush1.msra.mxu0 %v2740_v53  ;;  %1252 = vmatpush1.msra.mxu1 %v2746_v55  ;;  %v325_v50 = vadd.f32 %v3831_v49, %v3791_v7  ;;  %v3837_v49 = vld [vmem:[#allocation37_spill] sm:$0xff] }
 0x426   :  { %1182 = vmatprep.subr.mxu0 %v2744_v54  ;;  %1253 = vmatprep.subr.mxu1 %v2754_v57 }
 0x427   :  { %1183 = vmatpush1.msra.mxu0 %v3764_v56  ;;  %1254 = vmatpush1.msra.mxu1 %v3796_v12 }
 0x428   :  { %1184 = vmatprep.subr.mxu0 %v3797_v13  ;;  %1255 = vmatprep.subr.mxu1 %v3798_v14  ;;  %v3832_v13 = vld [vmem:[#allocation50_spill] sm:$0xff] }
 0x429   :  { %1185 = vmatpush1.msra.mxu0 %v3799_v16  ;;  %1256 = vmatpush1.msra.mxu1 %v3800_v17  ;;  %v438_v14 = vadd.f32 %v3832_v13, %v2851_v2  ;;  %v3833_v17 = vld [vmem:[#allocation48_spill] sm:$0xff]  ;;  %v3345_v13 = vld [vmem:[#allocation2 + $0xd8] sm:$0xff] }
 0x42a   :  { %1186 = vmatprep.subr.mxu0 %v3801_v18  ;;  %1257 = vmatprep.subr.mxu1 %v3802_v19  ;;  %v436_v18 = vadd.f32 %v3833_v17, %v2853_v24  ;;  %v3354_v17 = vld [vmem:[#allocation2 + $0xa8] sm:$0xff] }
 0x42b   :  { %1187 = vmatpush1.msra.mxu0 %v3803_v20  ;;  %1258 = vmatpush1.msra.mxu1 %v3804_v21 }
 0x42c   :  { %1188 = vmatprep.subr.mxu0 %v3805_v22  ;;  %1259 = vmatprep.subr.mxu1 %v3806_v23 }
 0x42d   :  { %1189 = vmatpush1.msra.mxu0 %v3807_v25  ;;  %1260 = vmatpush1.msra.mxu1 %v3808_v26 }
 0x42e   :  { %1190 = vmatprep.subr.mxu0 %v3809_v27  ;;  %1261 = vmatprep.subr.mxu1 %v3810_v28 }
 0x42f   :  { %1191 = vmatpush1.msra.mxu0 %v3811_v29  ;;  %1262 = vmatpush1.msra.mxu1 %v3812_v30 }
 0x430   :  { %1192 = vmatprep.subr.mxu0 %v3813_v31  ;;  %1263 = vmatprep.subr.mxu1 %v3814_v32 }
 0x431   :  { %1193 = vmatpush1.msra.mxu0 %v3815_v34  ;;  %1226 = vmatprep.mubr.f32.mxu0 %v3816_v35 }
 0x432   :  { %1264 = vmatpush1.msra.mxu1 %v3817_v36  ;;  %1297 = vmatprep.mubr.f32.mxu1 %v3816_v35 }
 0x433   :  { %1332 = vmatprep.subr.mxu0 %v3136_v37  ;;  %1403 = vmatprep.subr.mxu1 %v3139_v38 }
 0x4d2   :  { %v1058_v48 = vpop.f32.mrf.mxu0  ;;  %v1129_v57 = vpop.f32.mrf.mxu1 }
 0x4d3   :  { %v1134_v52 = vadd.f32 %v1058_v48, %v323_v47  ;;  %v1136_v19 = vadd.f32 %v1129_v57, %v436_v18  ;;  %v3836_v48 = vld [vmem:[#allocation39_spill] sm:$0xff]  ;;  %v3336_v57 = vld [vmem:[#allocation2 + $0xe0] sm:$0xff] }
 0x4d4   :  { %v1060_v53 = vpop.f32.mrf.mxu0  ;;  %v1131_v12 = vpop.f32.mrf.mxu1  ;;  %v3357_v18 = vld [vmem:[#allocation2 + $0xb8] sm:$0xff] }
 0x4d5   :  { %v2028_v54 = vmul.f32 -1.442695, %v1134_v52  ;;  %v1135_v55 = vadd.f32 %v1060_v53, %v325_v50  ;;  %v1137_v16 = vadd.f32 %v1131_v12, %v438_v14  ;;  %v3838_v50 = vld [vmem:[#allocation41_spill] sm:$0xff]  ;;  %v3839_v52 = vld [vmem:[#allocation42_spill] sm:$0xff]  ;;  %v3840_v53 = vld [vmem:[#allocation40_spill] sm:$0xff] }
 0x4d6   :  { %v3342_v12 = vld [vmem:[#allocation2 + $0xc8] sm:$0xff]  ;;  %v3348_v14 = vld [vmem:[#allocation2 + $0xc0] sm:$0xff] }
 0x4d7   :  { %2251 = vpow2.f32 %v2028_v54  ;;  %v2029_v56 = vmul.f32 -1.442695, %v1135_v55  ;;  %v2030_v20 = vmul.f32 -1.442695, %v1137_v16  ;;  %v3329_v54 = vld [vmem:[#allocation2 + $0x110] sm:$0xff]  ;;  %v3333_v55 = vld [vmem:[#allocation2 + $0xf8] sm:$0xff] }
 0x4d8   :  { %v3351_v16 = vld [vmem:[#allocation2 + $0xd0] sm:$0xff] }
 0x4d9   :  { %2253 = vpow2.f32 %v2029_v56  ;;  %v3339_v56 = vld [vmem:[#allocation2 + $0xf0] sm:$0xff] }
 0x4da   :  { %2255 = vtanh.f32 %v1136_v19  ;;  %v3360_v19 = vld [vmem:[#allocation2 + $0xa0] sm:$0xff] }
 0x4db   :  { %2257 = vpow2.f32 %v2030_v20  ;;  %v3363_v20 = vld [vmem:[#allocation2 + $0xb0] sm:$0xff] }
 0x4dc   :  { %3841 = vst [vmem:[#allocation15_spill] sm:$0xff] %v3363_v20 }
 0x4e4   :  { %v2252_v21 = vpop.eup %2251 }
 0x4e5   :  { %v1141_v22 = vadd.f32 1.0, %v2252_v21  ;;  %v3366_v21 = vld [vmem:[#allocation2 + $0x88] sm:$0xff] }
 0x4e6   :  { %v2254_v23 = vpop.eup %2253  ;;  %3842 = vst [vmem:[#allocation17_spill] sm:$0xff] %v3366_v21 }
 0x4e7   :  { %2259 = vrcp.f32 %v1141_v22  ;;  %v1147_v25 = vadd.f32 1.0, %v2254_v23  ;;  %v2256_v26 = vpop.eup %2255  ;;  %v3369_v22 = vld [vmem:[#allocation2 + $0x98] sm:$0xff]  ;;  %v3372_v23 = vld [vmem:[#allocation2 + $0x80] sm:$0xff] }
 0x4e8   :  { %v2258_v27 = vpop.eup %2257  ;;  %3843 = vst [vmem:[#allocation18_spill] sm:$0xff] %v3369_v22  ;;  %3844 = vst [vmem:[#allocation20_spill] sm:$0xff] %v3372_v23 }
 0x4e9   :  { %2261 = vrcp.f32 %v1147_v25  ;;  %v1154_v31 = vadd.f32 1.0, %v2258_v27  ;;  %v3375_v25 = vld [vmem:[#allocation2 + $0x90] sm:$0xff]  ;;  %v3381_v27 = vld [vmem:[#allocation2 + $0x78] sm:$0xff] }
 0x4ea   :  { %3845 = vst [vmem:[#allocation19_spill] sm:$0xff] %v3375_v25  ;;  %3847 = vst [vmem:[#allocation21_spill] sm:$0xff] %v3381_v27 }
 0x4eb   :  { %2263 = vrcp.f32 %v1154_v31  ;;  %v3393_v31 = vld [vmem:[#allocation2 + $0x58] sm:$0xff] }
 0x4ec   :  { %3851 = vst [vmem:[#allocation26_spill] sm:$0xff] %v3393_v31 }
 0x4f4   :  { %v2260_v28 = vpop.eup %2259 }
 0x4f5   :  { %v1158_v29 = vmul.f32 %v2260_v28, %v2256_v26  ;;  %v3378_v26 = vld [vmem:[#allocation2 + $0x68] sm:$0xff]  ;;  %v3384_v28 = vld [vmem:[#allocation2 + $0x60] sm:$0xff] }
 0x4f6   :  { %v2262_v30 = vpop.eup %2261  ;;  %3846 = vst [vmem:[#allocation22_spill] sm:$0xff] %v3378_v26  ;;  %3848 = vst [vmem:[#allocation24_spill] sm:$0xff] %v3384_v28 }
 0x4f7   :  { %v1157_v32 = vmul.f32 %v2262_v30, %v3151_v11  ;;  %v3835_v11 = vld [vmem:[#allocation13_spill] sm:$0xff] }
 0x4f8   :  { %v2264_v36 = vpop.eup %2263  ;;  %v3390_v30 = vld [vmem:[#allocation2 + $0x48] sm:$0xff] }
 0x4f9   :  { %v3293_v34 = vadd.f32 %v1158_v29, %v1157_v32  ;;  %v3387_v29 = vld [vmem:[#allocation2 + $0x70] sm:$0xff]  ;;  %3850 = vst [vmem:[#allocation25_spill] sm:$0xff] %v3390_v30  ;;  %v3396_v32 = vld [vmem:[#allocation2 + $0x40] sm:$0xff] }
 0x4fa   :  { %3849 = vst [vmem:[#allocation23_spill] sm:$0xff] %v3387_v29  ;;  %3852 = vst [vmem:[#allocation28_spill] sm:$0xff] %v3396_v32 }
 0x4fb   :  { %2265 = vtanh.f32 %v3293_v34 }
 0x508   :  { %v2266_v46 = vpop.eup %2265 }
 0x509   :  { %v3296_v47 = vmul.f32 %v2266_v46, %v2264_v36  ;;  %v3399_v36 = vld [vmem:[#allocation2 + $0x50] sm:$0xff]  ;;  %v3402_v46 = vld [vmem:[#allocation2 + $0x28] sm:$0xff] }
 0x50a   :  { %3853 = vst [vmem:[#allocation27_spill] sm:$0xff] %v3399_v36  ;;  %3854 = vst [vmem:[#allocation30_spill] sm:$0xff] %v3402_v46 }
 0x50b   :  { %3834 = vst [vmem:[#allocation16_spill] sm:$0xff] %v3296_v47  ;;  %1227 = vmatmul.mubr.f32.vlgmr.msra.gmra.mxu0 %v3296_v47  ;;  %1298 = vmatmul.mubr.f32.vlgmr.msra.gmra.mxu1 %v3296_v47  ;;  %v3405_v47 = vld [vmem:[#allocation2 + $0x38] sm:$0xff] }
 0x50c   :  { %1333 = vmatpush1.msra.mxu0 %v3158_v0  ;;  %1404 = vmatpush1.msra.mxu1 %v3161_v58  ;;  %3855 = vst [vmem:[#allocation29_spill] sm:$0xff] %v3405_v47 }
 0x50d   :  { %1334 = vmatprep.subr.mxu0 %v3164_v61  ;;  %1405 = vmatprep.subr.mxu1 %v3167_v15 }
 0x50e   :  { %1335 = vmatpush1.msra.mxu0 %v3170_v42  ;;  %1406 = vmatpush1.msra.mxu1 %v3173_v4 }
 0x50f   :  { %1336 = vmatprep.subr.mxu0 %v3176_v6  ;;  %1407 = vmatprep.subr.mxu1 %v3179_v8 }
 0x510   :  { %1337 = vmatpush1.msra.mxu0 %v3182_v62  ;;  %1408 = vmatpush1.msra.mxu1 %v3185_v59 }
 0x511   :  { %1338 = vmatprep.subr.mxu0 %v3188_v51  ;;  %1409 = vmatprep.subr.mxu1 %v3191_v1 }
 0x512   :  { %1339 = vmatpush1.msra.mxu0 %v3194_v5  ;;  %1410 = vmatpush1.msra.mxu1 %v3197_v40 }
 0x513   :  { %1340 = vmatprep.subr.mxu0 %v3200_v41  ;;  %1411 = vmatprep.subr.mxu1 %v3203_v43 }
 0x514   :  { %1341 = vmatpush1.msra.mxu0 %v3206_v44  ;;  %1412 = vmatpush1.msra.mxu1 %v3209_v45 }
 0x515   :  { %1342 = vmatprep.subr.mxu0 %v3835_v11  ;;  %1413 = vmatprep.subr.mxu1 %v3836_v48 }
 0x516   :  { %1343 = vmatpush1.msra.mxu0 %v3837_v49  ;;  %1414 = vmatpush1.msra.mxu1 %v3838_v50 }
 0x517   :  { %1344 = vmatprep.subr.mxu0 %v3839_v52  ;;  %1415 = vmatprep.subr.mxu1 %v3840_v53 }
 0x518   :  { %1345 = vmatpush1.msra.mxu0 %v3230_v60  ;;  %1416 = vmatpush1.msra.mxu1 %v3233_v63 }
 0x519   :  { %1346 = vmatprep.subr.mxu0 %v3236_v9  ;;  %1417 = vmatprep.subr.mxu1 %v3239_v10 }
 0x51a   :  { %1347 = vmatpush1.msra.mxu0 %v3242_v33  ;;  %1418 = vmatpush1.msra.mxu1 %v3329_v54 }
 0x51b   :  { %1348 = vmatprep.subr.mxu0 %v3246_v3  ;;  %1419 = vmatprep.subr.mxu1 %v3333_v55 }
 0x51c   :  { %1349 = vmatpush1.msra.mxu0 %v3336_v57  ;;  %1420 = vmatpush1.msra.mxu1 %v3339_v56 }
 0x51d   :  { %1350 = vmatprep.subr.mxu0 %v3342_v12  ;;  %1421 = vmatprep.subr.mxu1 %v3345_v13 }
 0x51e   :  { %1351 = vmatpush1.msra.mxu0 %v3348_v14  ;;  %1422 = vmatpush1.msra.mxu1 %v3351_v16 }
 0x51f   :  { %1352 = vmatprep.subr.mxu0 %v3354_v17  ;;  %1423 = vmatprep.subr.mxu1 %v3357_v18 }
 0x520   :  { %1353 = vmatpush1.msra.mxu0 %v3360_v19  ;;  %1424 = vmatpush1.msra.mxu1 %v3363_v20 }
 0x521   :  { %1354 = vmatprep.subr.mxu0 %v3366_v21  ;;  %1425 = vmatprep.subr.mxu1 %v3369_v22  ;;  %v3865_v22 = vld [vmem:[#allocation52_spill] sm:$0xff] }
 0x522   :  { %1355 = vmatpush1.msra.mxu0 %v3372_v23  ;;  %1426 = vmatpush1.msra.mxu1 %v3375_v25 }
 0x523   :  { %1356 = vmatprep.subr.mxu0 %v3378_v26  ;;  %1427 = vmatprep.subr.mxu1 %v3381_v27 }
 0x524   :  { %1357 = vmatpush1.msra.mxu0 %v3384_v28  ;;  %1428 = vmatpush1.msra.mxu1 %v3387_v29 }
 0x525   :  { %1358 = vmatprep.subr.mxu0 %v3390_v30  ;;  %1429 = vmatprep.subr.mxu1 %v3393_v31  ;;  %v3408_v30 = vld [vmem:[#allocation2 + $0x20] sm:$0xff]  ;;  %v3411_v31 = vld [vmem:[#allocation2 + $0x30] sm:$0xff] }
 0x526   :  { %1359 = vmatpush1.msra.mxu0 %v3396_v32  ;;  %1430 = vmatpush1.msra.mxu1 %v3399_v36  ;;  %3856 = vst [vmem:[#allocation32_spill] sm:$0xff] %v3408_v30  ;;  %3857 = vst [vmem:[#allocation31_spill] sm:$0xff] %v3411_v31  ;;  %v3414_v32 = vld [vmem:[#allocation2 + $0x8] sm:$0xff]  ;;  %v3417_v36 = vld [vmem:[#allocation2 + $0x18] sm:$0xff] }
 0x527   :  { %1360 = vmatprep.subr.mxu0 %v3402_v46  ;;  %1431 = vmatprep.subr.mxu1 %v3405_v47  ;;  %3858 = vst [vmem:[#allocation34_spill] sm:$0xff] %v3414_v32  ;;  %3859 = vst [vmem:[#allocation33_spill] sm:$0xff] %v3417_v36  ;;  %v3420_v46 = vld [vmem:[#allocation2] sm:$0xff]  ;;  %v3424_v47 = vld [vmem:[#allocation2 + $0x10] sm:$0xff] }
 0x528   :  { %1361 = vmatpush1.msra.mxu0 %v3408_v30  ;;  %1432 = vmatpush1.msra.mxu1 %v3411_v31  ;;  %3860 = vst [vmem:[#allocation35_spill] sm:$0xff] %v3420_v46  ;;  %3861 = vst [vmem:[#allocation43_spill] sm:$0xff] %v3424_v47  ;;  %v3863_v30 = vld [vmem:[#allocation53_spill] sm:$0xff] }
 0x529   :  { %1362 = vmatprep.subr.mxu0 %v3414_v32  ;;  %1433 = vmatprep.subr.mxu1 %v3417_v36  ;;  %v3862_v32 = vld [vmem:[#allocation51_spill] sm:$0xff]  ;;  %v331_v29 = vadd.f32 %v3863_v30, %v3791_v7 }
 0x52a   :  { %1363 = vmatpush1.msra.mxu0 %v3420_v46  ;;  %1396 = vmatprep.mubr.f32.mxu0 %v3816_v35  ;;  %v329_v31 = vadd.f32 %v3862_v32, %v3818_v39  ;;  %v442_v32 = vadd.f32 %v3865_v22, %v2853_v24 }
 0x52b   :  { %1434 = vmatpush1.msra.mxu1 %v3424_v47  ;;  %1467 = vmatprep.mubr.f32.mxu1 %v3816_v35 }
 0x52c   :  { %1502 = vmatprep.subr.mxu0 %v3136_v37  ;;  %1573 = vmatprep.subr.mxu1 %v3139_v38  ;;  %v3864_v37 = vld [vmem:[#allocation54_spill] sm:$0xff] }
 0x52d   :  { %v444_v23 = vadd.f32 %v3864_v37, %v2851_v2 }
 0x5cb   :  { %v1228_v36 = vpop.f32.mrf.mxu0  ;;  %v1299_v25 = vpop.f32.mrf.mxu1 }
 0x5cc   :  { %v1304_v46 = vadd.f32 %v1228_v36, %v329_v31  ;;  %v1306_v39 = vadd.f32 %v1299_v25, %v442_v32 }
 0x5cd   :  { %v1230_v28 = vpop.f32.mrf.mxu0  ;;  %v1301_v35 = vpop.f32.mrf.mxu1 }
 0x5ce   :  { %v2031_v27 = vmul.f32 -1.442695, %v1304_v46  ;;  %v1305_v26 = vadd.f32 %v1230_v28, %v331_v29  ;;  %v1307_v38 = vadd.f32 %v1301_v35, %v444_v23 }
 0x5d0   :  { %2267 = vpow2.f32 %v2031_v27  ;;  %v2032_v47 = vmul.f32 -1.442695, %v1305_v26  ;;  %v2033_v21 = vmul.f32 -1.442695, %v1307_v38 }
 0x5d2   :  { %2269 = vpow2.f32 %v2032_v47 }
 0x5d3   :  { %2271 = vtanh.f32 %v1306_v39 }
 0x5d4   :  { %2273 = vpow2.f32 %v2033_v21 }
 0x5dd   :  { %v2268_v20 = vpop.eup %2267 }
 0x5de   :  { %v1311_v30 = vadd.f32 1.0, %v2268_v20 }
 0x5df   :  { %v2270_v31 = vpop.eup %2269 }
 0x5e0   :  { %2275 = vrcp.f32 %v1311_v30  ;;  %v1317_v27 = vadd.f32 1.0, %v2270_v31  ;;  %v2272_v26 = vpop.eup %2271 }
 0x5e1   :  { %v2274_v47 = vpop.eup %2273 }
 0x5e2   :  { %2277 = vrcp.f32 %v1317_v27  ;;  %v1324_v46 = vadd.f32 1.0, %v2274_v47 }
 0x5e4   :  { %2279 = vrcp.f32 %v1324_v46 }
 0x5ed   :  { %v2276_v28 = vpop.eup %2275 }
 0x5ee   :  { %v1328_v29 = vmul.f32 %v2276_v28, %v2272_v26 }
 0x5ef   :  { %v2278_v36 = vpop.eup %2277 }
 0x5f0   :  { %v1327_v35 = vmul.f32 %v2278_v36, %v3293_v34  ;;  %v3889_v34 = vld [vmem:[#allocation55_spill] sm:$0xff] }
 0x5f1   :  { %v2280_v20 = vpop.eup %2279 }
 0x5f2   :  { %v3439_v23 = vadd.f32 %v1328_v29, %v1327_v35 }
 0x5f4   :  { %2281 = vtanh.f32 %v3439_v23 }
 0x601   :  { %v2282_v39 = vpop.eup %2281 }
 0x602   :  { %v3442_v22 = vmul.f32 %v2282_v39, %v2280_v20  ;;  %v158_v39 = vld [vmem:[#allocation5 + $0x70] sm:$0xff] }
 0x604   :  { %1397 = vmatmul.mubr.f32.vlgmr.msra.gmra.mxu0 %v3442_v22  ;;  %1468 = vmatmul.mubr.f32.vlgmr.msra.gmra.mxu1 %v3442_v22 }
 0x605   :  { %1503 = vmatpush1.msra.mxu0 %v3158_v0  ;;  %1574 = vmatpush1.msra.mxu1 %v3161_v58  ;;  %v3868_v0 = vld [vmem:[#allocation18_spill] sm:$0xff]  ;;  %v3869_v58 = vld [vmem:[#allocation20_spill] sm:$0xff] }
 0x606   :  { %1504 = vmatprep.subr.mxu0 %v3164_v61  ;;  %1575 = vmatprep.subr.mxu1 %v3167_v15  ;;  %v3870_v61 = vld [vmem:[#allocation19_spill] sm:$0xff]  ;;  %v3871_v15 = vld [vmem:[#allocation22_spill] sm:$0xff] }
 0x607   :  { %1505 = vmatpush1.msra.mxu0 %v3170_v42  ;;  %1576 = vmatpush1.msra.mxu1 %v3173_v4  ;;  %v3872_v42 = vld [vmem:[#allocation21_spill] sm:$0xff]  ;;  %v3873_v4 = vld [vmem:[#allocation24_spill] sm:$0xff] }
 0x608   :  { %1506 = vmatprep.subr.mxu0 %v3176_v6  ;;  %1577 = vmatprep.subr.mxu1 %v3179_v8  ;;  %v3874_v6 = vld [vmem:[#allocation23_spill] sm:$0xff]  ;;  %v3875_v8 = vld [vmem:[#allocation25_spill] sm:$0xff] }
 0x609   :  { %1507 = vmatpush1.msra.mxu0 %v3182_v62  ;;  %1578 = vmatpush1.msra.mxu1 %v3185_v59  ;;  %v3876_v62 = vld [vmem:[#allocation26_spill] sm:$0xff]  ;;  %v3877_v59 = vld [vmem:[#allocation28_spill] sm:$0xff] }
 0x60a   :  { %1508 = vmatprep.subr.mxu0 %v3188_v51  ;;  %1579 = vmatprep.subr.mxu1 %v3191_v1  ;;  %v3878_v51 = vld [vmem:[#allocation27_spill] sm:$0xff]  ;;  %v3879_v1 = vld [vmem:[#allocation30_spill] sm:$0xff] }
 0x60b   :  { %1509 = vmatpush1.msra.mxu0 %v3194_v5  ;;  %1580 = vmatpush1.msra.mxu1 %v3197_v40  ;;  %v3880_v5 = vld [vmem:[#allocation29_spill] sm:$0xff]  ;;  %v3881_v40 = vld [vmem:[#allocation32_spill] sm:$0xff] }
 0x60c   :  { %1510 = vmatprep.subr.mxu0 %v3200_v41  ;;  %1581 = vmatprep.subr.mxu1 %v3203_v43  ;;  %v3882_v41 = vld [vmem:[#allocation31_spill] sm:$0xff]  ;;  %v3883_v43 = vld [vmem:[#allocation34_spill] sm:$0xff] }
 0x60d   :  { %1511 = vmatpush1.msra.mxu0 %v3206_v44  ;;  %1582 = vmatpush1.msra.mxu1 %v3209_v45  ;;  %v3884_v44 = vld [vmem:[#allocation33_spill] sm:$0xff]  ;;  %v3885_v45 = vld [vmem:[#allocation35_spill] sm:$0xff] }
 0x60e   :  { %1512 = vmatprep.subr.mxu0 %v3835_v11  ;;  %1583 = vmatprep.subr.mxu1 %v3836_v48 }
 0x60f   :  { %1513 = vmatpush1.msra.mxu0 %v3837_v49  ;;  %1584 = vmatpush1.msra.mxu1 %v3838_v50  ;;  %v3890_v49 = vld [vmem:[#allocation57_spill] sm:$0xff] }
 0x610   :  { %1514 = vmatprep.subr.mxu0 %v3839_v52  ;;  %1585 = vmatprep.subr.mxu1 %v3840_v53  ;;  %v337_v50 = vadd.f32 %v3890_v49, %v3791_v7 }
 0x611   :  { %1515 = vmatpush1.msra.mxu0 %v3230_v60  ;;  %1586 = vmatpush1.msra.mxu1 %v3233_v63  ;;  %v3886_v60 = vmov 0.0   ;;  %v3887_v63 = vld [vmem:[#allocation43_spill] sm:$0xff] }
 0x612   :  { %1516 = vmatprep.subr.mxu0 %v3236_v9  ;;  %1587 = vmatprep.subr.mxu1 %v3239_v10  ;;  %v159_v9 = vld [vmem:[#allocation5 + $0x78] sm:$0xff]  ;;  %v3888_v10 = vld [vmem:[#allocation36_spill] sm:$0xff] }
 0x613   :  { %1517 = vmatpush1.msra.mxu0 %v3242_v33  ;;  %1588 = vmatpush1.msra.mxu1 %v3329_v54  ;;  %v3867_v33 = vld [vmem:[#allocation17_spill] sm:$0xff]  ;;  %v335_v11 = vadd.f32 %v3889_v34, %v3888_v10  ;;  %v1677_v34 = vmax.f32 %v3442_v22, 0.0  ;;  %v3900_v22 = vld [vmem:[#allocation62_spill] sm:$0xff] }
 0x614   :  { %1518 = vmatprep.subr.mxu0 %v3246_v3  ;;  %1589 = vmatprep.subr.mxu1 %v3333_v55  ;;  %v3866_v3 = vld [vmem:[#allocation15_spill] sm:$0xff] }
 0x615   :  { %1519 = vmatpush1.msra.mxu0 %v3336_v57  ;;  %1590 = vmatpush1.msra.mxu1 %v3339_v56 }
 0x616   :  { %1520 = vmatprep.subr.mxu0 %v3342_v12  ;;  %1591 = vmatprep.subr.mxu1 %v3345_v13  ;;  %v3891_v13 = vld [vmem:[#allocation58_spill] sm:$0xff] }
 0x617   :  { %1521 = vmatpush1.msra.mxu0 %v3348_v14  ;;  %1592 = vmatpush1.msra.mxu1 %v3351_v16  ;;  %v450_v14 = vadd.f32 %v3891_v13, %v2851_v2 }
 0x618   :  { %1522 = vmatprep.subr.mxu0 %v3354_v17  ;;  %1593 = vmatprep.subr.mxu1 %v3357_v18  ;;  %v3892_v17 = vld [vmem:[#allocation56_spill] sm:$0xff] }
 0x619   :  { %1523 = vmatpush1.msra.mxu0 %v3360_v19  ;;  %1594 = vmatpush1.msra.mxu1 %v3866_v3  ;;  %v448_v18 = vadd.f32 %v3892_v17, %v2853_v24  ;;  %v3893_v3 = vld [vmem:[#allocation38_spill] sm:$0xff] }
 0x61a   :  { %1524 = vmatprep.subr.mxu0 %v3867_v33  ;;  %1595 = vmatprep.subr.mxu1 %v3868_v0  ;;  %v1672_v33 = vmax.f32 %v3893_v3, 0.0  ;;  %v157_v0 = vld [vmem:[#allocation5 + $0x68] sm:$0xff] }
 0x61b   :  { %1525 = vmatpush1.msra.mxu0 %v3869_v58  ;;  %1596 = vmatpush1.msra.mxu1 %v3870_v61  ;;  %v156_v58 = vld [vmem:[#allocation5 + $0x60] sm:$0xff]  ;;  %v154_v61 = vld [vmem:[#allocation5 + $0x50] sm:$0xff] }
 0x61c   :  { %1526 = vmatprep.subr.mxu0 %v3871_v15  ;;  %1597 = vmatprep.subr.mxu1 %v3872_v42  ;;  %v153_v15 = vld [vmem:[#allocation5 + $0x48] sm:$0xff]  ;;  %v152_v42 = vld [vmem:[#allocation5 + $0x40] sm:$0xff] }
 0x61d   :  { %1527 = vmatpush1.msra.mxu0 %v3873_v4  ;;  %1598 = vmatpush1.msra.mxu1 %v3874_v6  ;;  %v151_v4 = vld [vmem:[#allocation5 + $0x38] sm:$0xff]  ;;  %v150_v6 = vld [vmem:[#allocation5 + $0x30] sm:$0xff] }
 0x61e   :  { %1528 = vmatprep.subr.mxu0 %v3875_v8  ;;  %1599 = vmatprep.subr.mxu1 %v3876_v62  ;;  %v149_v8 = vld [vmem:[#allocation5 + $0x28] sm:$0xff]  ;;  %v148_v62 = vld [vmem:[#allocation5 + $0x20] sm:$0xff] }
 0x61f   :  { %1529 = vmatpush1.msra.mxu0 %v3877_v59  ;;  %1600 = vmatpush1.msra.mxu1 %v3878_v51  ;;  %v147_v59 = vld [vmem:[#allocation5 + $0x18] sm:$0xff]  ;;  %v146_v51 = vld [vmem:[#allocation5 + $0x10] sm:$0xff] }
 0x620   :  { %1530 = vmatprep.subr.mxu0 %v3879_v1  ;;  %1601 = vmatprep.subr.mxu1 %v3880_v5  ;;  %v145_v1 = vld [vmem:[#allocation5 + $0x8] sm:$0xff]  ;;  %v144_v5 = vld [vmem:[#allocation5] sm:$0xff] }
 0x621   :  { %1531 = vmatpush1.msra.mxu0 %v3881_v40  ;;  %1602 = vmatpush1.msra.mxu1 %v3882_v41  ;;  %v3894_v40 = vld [vmem:[#allocation63_spill] sm:$0xff] }
 0x622   :  { %1532 = vmatprep.subr.mxu0 %v3883_v43  ;;  %1603 = vmatprep.subr.mxu1 %v3884_v44  ;;  %v1673_v41 = vmax.f32 %v3894_v40, 0.0  ;;  %v3895_v43 = vld [vmem:[#allocation14_spill] sm:$0xff] }
 0x623   :  { %1533 = vmatpush1.msra.mxu0 %v3885_v45  ;;  %1566 = vmatprep.mubr.f32.mxu0 %v3886_v60  ;;  %v1674_v44 = vmax.f32 %v3895_v43, 0.0  ;;  %v3896_v45 = vld [vmem:[#allocation12_spill] sm:$0xff] }
 0x624   :  { %1604 = vmatpush1.msra.mxu1 %v3887_v63  ;;  %1637 = vmatprep.mubr.f32.mxu1 %v3886_v60  ;;  %v1675_v60 = vmax.f32 %v3896_v45, 0.0  ;;  %v3897_v63 = vld [vmem:[#allocation16_spill] sm:$0xff] }
 0x625   :  { %2090 = vmatprep.subr.mxu0 %v159_v9 }
 0x6c4   :  { %v1398_v48 = vpop.f32.mrf.mxu0  ;;  %v1469_v57 = vpop.f32.mrf.mxu1 }
 0x6c5   :  { %v1474_v52 = vadd.f32 %v1398_v48, %v335_v11  ;;  %v1476_v19 = vadd.f32 %v1469_v57, %v448_v18  ;;  %v3898_v48 = vld [vmem:[#allocation59_spill] sm:$0xff]  ;;  %v3901_v18 = vld [vmem:[#allocation60_spill] sm:$0xff] }
 0x6c6   :  { %v1400_v53 = vpop.f32.mrf.mxu0  ;;  %v1471_v12 = vpop.f32.mrf.mxu1  ;;  %v341_v49 = vadd.f32 %v3898_v48, %v3888_v10  ;;  %v454_v10 = vadd.f32 %v3901_v18, %v2853_v24 }
 0x6c7   :  { %v2034_v54 = vmul.f32 -1.442695, %v1474_v52  ;;  %v1475_v55 = vadd.f32 %v1400_v53, %v337_v50  ;;  %v1477_v16 = vadd.f32 %v1471_v12, %v450_v14  ;;  %v3899_v52 = vld [vmem:[#allocation61_spill] sm:$0xff] }
 0x6c8   :  { %v343_v53 = vadd.f32 %v3899_v52, %v3791_v7 }
 0x6c9   :  { %2283 = vpow2.f32 %v2034_v54  ;;  %v2035_v56 = vmul.f32 -1.442695, %v1475_v55  ;;  %v2036_v21 = vmul.f32 -1.442695, %v1477_v16  ;;  %v456_v16 = vadd.f32 %v3900_v22, %v2851_v2  ;;  %v3539_v2 = vld [vmem:[%s3588_s5] ss:$0 sm:$0xff] }
 0x6cb   :  { %2285 = vpow2.f32 %v2035_v56 }
 0x6cc   :  { %2287 = vtanh.f32 %v1476_v19 }
 0x6cd   :  { %2289 = vpow2.f32 %v2036_v21 }
 0x6d6   :  { %v2284_v25 = vpop.eup %2283 }
 0x6d7   :  { %v1481_v37 = vadd.f32 1.0, %v2284_v25 }
 0x6d8   :  { %v2286_v38 = vpop.eup %2285 }
 0x6d9   :  { %2291 = vrcp.f32 %v1481_v37  ;;  %v1487_v32 = vadd.f32 1.0, %v2286_v38  ;;  %v2288_v30 = vpop.eup %2287 }
 0x6da   :  { %v2290_v31 = vpop.eup %2289 }
 0x6db   :  { %2293 = vrcp.f32 %v1487_v32  ;;  %v1494_v28 = vadd.f32 1.0, %v2290_v31 }
 0x6dd   :  { %2295 = vrcp.f32 %v1494_v28 }
 0x6e6   :  { %v2292_v27 = vpop.eup %2291 }
 0x6e7   :  { %v1498_v26 = vmul.f32 %v2292_v27, %v2288_v30 }
 0x6e8   :  { %v2294_v47 = vpop.eup %2293 }
 0x6e9   :  { %v1497_v29 = vmul.f32 %v2294_v47, %v3439_v23  ;;  %v155_v23 = vld [vmem:[#allocation5 + $0x58] sm:$0xff] }
 0x6ea   :  { %v2296_v46 = vpop.eup %2295 }
 0x6eb   :  { %v3519_v36 = vadd.f32 %v1498_v26, %v1497_v29 }
 0x6ed   :  { %2297 = vtanh.f32 %v3519_v36 }
 0x6fa   :  { %v2298_v35 = vpop.eup %2297 }
 0x6fb   :  { %v1501_v20 = vmul.f32 %v2298_v35, %v2296_v46 }
 0x6fd   :  { %1567 = vmatmul.mubr.f32.vlgmr.msra.gmra.mxu0 %v1501_v20  ;;  %1638 = vmatmul.mubr.f32.vlgmr.msra.gmra.mxu1 %v1501_v20  ;;  %v1678_v11 = vmax.f32 %v1501_v20, 0.0 }
 0x6fe   :  { %2091 = vmatpush3.msra.mxu0 %v159_v9  ;;  %2122 = vmatprep.mubr.f32.mxu0 %v1672_v33  ;;  %v1676_v9 = vmax.f32 %v3897_v63, 0.0 }
 0x6ff   :  { %2092 = vmatprep.subr.mxu0 %v158_v39 }
 0x700   :  { %2093 = vmatpush3.msra.mxu0 %v158_v39 }
 0x701   :  { %2094 = vmatprep.subr.mxu0 %v157_v0 }
 0x702   :  { %2095 = vmatpush3.msra.mxu0 %v157_v0 }
 0x703   :  { %2096 = vmatprep.subr.mxu0 %v156_v58 }
 0x704   :  { %2097 = vmatpush3.msra.mxu0 %v156_v58 }
 0x705   :  { %2098 = vmatprep.subr.mxu0 %v155_v23 }
 0x706   :  { %2099 = vmatpush3.msra.mxu0 %v155_v23 }
 0x707   :  { %2100 = vmatprep.subr.mxu0 %v154_v61 }
 0x708   :  { %2101 = vmatpush3.msra.mxu0 %v154_v61 }
 0x709   :  { %2102 = vmatprep.subr.mxu0 %v153_v15 }
 0x70a   :  { %2103 = vmatpush3.msra.mxu0 %v153_v15 }
 0x70b   :  { %2104 = vmatprep.subr.mxu0 %v152_v42 }
 0x70c   :  { %2105 = vmatpush3.msra.mxu0 %v152_v42 }
 0x70d   :  { %2106 = vmatprep.subr.mxu0 %v151_v4 }
 0x70e   :  { %2107 = vmatpush3.msra.mxu0 %v151_v4 }
 0x70f   :  { %2108 = vmatprep.subr.mxu0 %v150_v6 }
 0x710   :  { %2109 = vmatpush3.msra.mxu0 %v150_v6 }
 0x711   :  { %2110 = vmatprep.subr.mxu0 %v149_v8 }
 0x712   :  { %2111 = vmatpush3.msra.mxu0 %v149_v8  ;;  %v176_v8 = vld [vmem:[#allocation7 + $0x78] sm:$0xff] }
 0x713   :  { %2112 = vmatprep.subr.mxu0 %v148_v62  ;;  %2134 = vmatprep.subr.mxu1 %v176_v8 }
 0x714   :  { %2113 = vmatpush3.msra.mxu0 %v148_v62  ;;  %v175_v62 = vld [vmem:[#allocation7 + $0x70] sm:$0xff]  ;;  %2135 = vmatpush3.msra.mxu1 %v176_v8 }
 0x715   :  { %2114 = vmatprep.subr.mxu0 %v147_v59  ;;  %2136 = vmatprep.subr.mxu1 %v175_v62 }
 0x716   :  { %2115 = vmatpush3.msra.mxu0 %v147_v59  ;;  %v174_v59 = vld [vmem:[#allocation7 + $0x68] sm:$0xff]  ;;  %2137 = vmatpush3.msra.mxu1 %v175_v62 }
 0x717   :  { %2116 = vmatprep.subr.mxu0 %v146_v51  ;;  %2138 = vmatprep.subr.mxu1 %v174_v59 }
 0x718   :  { %2117 = vmatpush3.msra.mxu0 %v146_v51  ;;  %v173_v51 = vld [vmem:[#allocation7 + $0x60] sm:$0xff]  ;;  %2139 = vmatpush3.msra.mxu1 %v174_v59 }
 0x719   :  { %2118 = vmatprep.subr.mxu0 %v145_v1  ;;  %2140 = vmatprep.subr.mxu1 %v173_v51 }
 0x71a   :  { %2119 = vmatpush3.msra.mxu0 %v145_v1  ;;  %v172_v1 = vld [vmem:[#allocation7 + $0x58] sm:$0xff]  ;;  %2141 = vmatpush3.msra.mxu1 %v173_v51 }
 0x71b   :  { %2120 = vmatprep.subr.mxu0 %v144_v5  ;;  %2142 = vmatprep.subr.mxu1 %v172_v1 }
 0x71c   :  { %2121 = vmatpush3.msra.mxu0 %v144_v5  ;;  %2143 = vmatpush3.msra.mxu1 %v172_v1 }
 0x71d   :  { %2123 = vmatmul.mubr.f32.vlgmr.msra.gmra.mxu0 %v1673_v41 }
 0x71e   :  { %2125 = vmatprep.mubr.f32.mxu0 %v1674_v44 }
 0x721   :  { %2126 = vmatmul.mubr.f32.gmra.mxu0 %v1675_v60 }
 0x722   :  { %2128 = vmatprep.mubr.f32.mxu0 %v1676_v9 }
 0x725   :  { %2129 = vmatmul.mubr.f32.gmra.mxu0 %v1677_v34 }
 0x726   :  { %2131 = vmatprep.mubr.f32.mxu0 %v1678_v11 }
 0x7bd   :  { %v1568_v50 = vpop.f32.mrf.mxu0  ;;  %v1639_v12 = vpop.f32.mrf.mxu1 }
 0x7be   :  { %v1644_v54 = vadd.f32 %v1568_v50, %v341_v49  ;;  %v1646_v19 = vadd.f32 %v1639_v12, %v454_v10  ;;  %v171_v10 = vld [vmem:[#allocation7 + $0x50] sm:$0xff] }
 0x7bf   :  { %v1570_v55 = vpop.f32.mrf.mxu0  ;;  %v1641_v14 = vpop.f32.mrf.mxu1  ;;  %2144 = vmatprep.subr.mxu1 %v171_v10 }
 0x7c0   :  { %v2037_v57 = vmul.f32 -1.442695, %v1644_v54  ;;  %v1645_v56 = vadd.f32 %v1570_v55, %v343_v53  ;;  %v1647_v17 = vadd.f32 %v1641_v14, %v456_v16  ;;  %2145 = vmatpush3.msra.mxu1 %v171_v10 }
 0x7c2   :  { %2299 = vpow2.f32 %v2037_v57  ;;  %v2038_v13 = vmul.f32 -1.442695, %v1645_v56  ;;  %v2039_v21 = vmul.f32 -1.442695, %v1647_v17 }
 0x7c4   :  { %2301 = vpow2.f32 %v2038_v13 }
 0x7c5   :  { %2303 = vtanh.f32 %v1646_v19 }
 0x7c6   :  { %2305 = vpow2.f32 %v2039_v21  ;;  %v170_v21 = vld [vmem:[#allocation7 + $0x48] sm:$0xff] }
 0x7c7   :  { %2146 = vmatprep.subr.mxu1 %v170_v21 }
 0x7c8   :  { %2147 = vmatpush3.msra.mxu1 %v170_v21 }
 0x7cf   :  { %v2300_v25 = vpop.eup %2299 }
 0x7d0   :  { %v1651_v7 = vadd.f32 1.0, %v2300_v25  ;;  %v169_v25 = vld [vmem:[#allocation7 + $0x40] sm:$0xff] }
 0x7d1   :  { %v2302_v37 = vpop.eup %2301  ;;  %2148 = vmatprep.subr.mxu1 %v169_v25 }
 0x7d2   :  { %2307 = vrcp.f32 %v1651_v7  ;;  %v1657_v38 = vadd.f32 1.0, %v2302_v37  ;;  %v2304_v32 = vpop.eup %2303  ;;  %v168_v7 = vld [vmem:[#allocation7 + $0x38] sm:$0xff]  ;;  %2149 = vmatpush3.msra.mxu1 %v169_v25  ;;  %v167_v37 = vld [vmem:[#allocation7 + $0x30] sm:$0xff] }
 0x7d3   :  { %v2306_v31 = vpop.eup %2305  ;;  %2150 = vmatprep.subr.mxu1 %v168_v7 }
 0x7d4   :  { %2309 = vrcp.f32 %v1657_v38  ;;  %v1664_v29 = vadd.f32 1.0, %v2306_v31  ;;  %2151 = vmatpush3.msra.mxu1 %v168_v7  ;;  %v166_v38 = vld [vmem:[#allocation7 + $0x28] sm:$0xff]  ;;  %v163_v31 = vld [vmem:[#allocation7 + $0x10] sm:$0xff] }
 0x7d5   :  { %2152 = vmatprep.subr.mxu1 %v167_v37 }
 0x7d6   :  { %2311 = vrcp.f32 %v1664_v29  ;;  %2153 = vmatpush3.msra.mxu1 %v167_v37 }
 0x7d7   :  { %2154 = vmatprep.subr.mxu1 %v166_v38 }
 0x7d8   :  { %2155 = vmatpush3.msra.mxu1 %v166_v38 }
 0x7dd   :  { %v2124_v30 = vpop.f32.mrf.mxu0 }
 0x7de   :  { %v1758_v39 = vadd.f32 %v2124_v30, %v3539_v2  ;;  %v164_v30 = vld [vmem:[#allocation7 + $0x18] sm:$0xff] }
 0x7df   :  { %v2308_v27 = vpop.eup %2307  ;;  %v1752_v24 = vpop.f32.mrf.mxu0 }
 0x7e0   :  { %v1668_v26 = vmul.f32 %v2308_v27, %v2304_v32  ;;  %v1753_v47 = vadd.f32 %v3539_v2, %v1752_v24  ;;  %v165_v32 = vld [vmem:[#allocation7 + $0x20] sm:$0xff]  ;;  %v162_v27 = vld [vmem:[#allocation7 + $0x8] sm:$0xff] }
 0x7e1   :  { %v2310_v28 = vpop.eup %2309  ;;  %v2127_v46 = vpop.f32.mrf.mxu0  ;;  %2156 = vmatprep.subr.mxu1 %v165_v32 }
 0x7e2   :  { %v1667_v35 = vmul.f32 %v2310_v28, %v3519_v36  ;;  %1791 = vmax.xlane.f32.xlu0 %v1753_v47  ;;  %v1768_v23 = vadd.f32 %v2127_v46, %v3539_v2  ;;  %2157 = vmatpush3.msra.mxu1 %v165_v32 }
 0x7e3   :  { %v1762_v20 = vpop.f32.mrf.mxu0  ;;  %v2312_v15 = vpop.eup %2311  ;;  %2158 = vmatprep.subr.mxu1 %v164_v30 }
 0x7e4   :  { %v1763_v3 = vadd.f32 %v3539_v2, %v1762_v20  ;;  %v1669_v33 = vadd.f32 %v1668_v26, %v1667_v35  ;;  %2159 = vmatpush3.msra.mxu1 %v164_v30 }
 0x7e5   :  { %v2130_v0 = vpop.f32.mrf.mxu0  ;;  %2160 = vmatprep.subr.mxu1 %v163_v31 }
 0x7e6   :  { %1795 = vmax.xlane.f32.xlu1 %v1763_v3  ;;  %1793 = vmax.xlane.f32.xlu0 %v1758_v39  ;;  %2313 = vtanh.f32 %v1669_v33  ;;  %v1778_v36 = vadd.f32 %v2130_v0, %v3539_v2 }
 0x7e7   :  { %v1772_v58 = vpop.f32.mrf.mxu0  ;;  %2161 = vmatpush3.msra.mxu1 %v163_v31 }
 0x7e8   :  { %v1773_v61 = vadd.f32 %v3539_v2, %v1772_v58  ;;  %2162 = vmatprep.subr.mxu1 %v162_v27 }
 0x7e9   :  { %2163 = vmatpush3.msra.mxu1 %v162_v27 }
 0x7ea   :  { %1797 = vmax.xlane.f32.xlu1 %v1768_v23  ;;  %1799 = vmax.xlane.f32.xlu0 %v1773_v61 }
 0x7ee   :  { %1801 = vmax.xlane.f32.xlu1 %v1778_v36 }
 0x7f3   :  { %v2314_v42 = vpop.eup %2313 }
 0x7f4   :  { %v1671_v4 = vmul.f32 %v2314_v42, %v2312_v15 }
 0x7f6   :  { %v1679_v6 = vmax.f32 %v1671_v4, 0.0 }
 0x7f8   :  { %2132 = vmatmul.mubr.f32.gmra.mxu0 %v1679_v6 }
 0x86b   :  { %v1792_v5 = vpop.xlane.xlu0 %1791 }
 0x86c   :  { %v1807_v45 = vsub.f32 %v1753_v47, %v1792_v5 }
 0x86e   :  { %v1815_v34 = vmul.f32 1.442695, %v1807_v45 }
 0x86f   :  { %v1796_v40 = vpop.xlane.xlu1 %1795  ;;  %v1794_v41 = vpop.xlane.xlu0 %1793 }
 0x870   :  { %v1808_v44 = vsub.f32 %v1758_v39, %v1794_v41  ;;  %v1809_v11 = vsub.f32 %v1763_v3, %v1796_v40 }
 0x872   :  { %v1817_v60 = vmul.f32 1.442695, %v1808_v44  ;;  %v1819_v52 = vmul.f32 1.442695, %v1809_v11 }
 0x873   :  { %v1798_v43 = vpop.xlane.xlu1 %1797  ;;  %v1800_v48 = vpop.xlane.xlu0 %1799 }
 0x874   :  { %v1810_v63 = vsub.f32 %v1768_v23, %v1798_v43  ;;  %2315 = vpow2.f32 %v1817_v60  ;;  %v1811_v53 = vsub.f32 %v1773_v61, %v1800_v48 }
 0x875   :  { %2317 = vpow2.f32 %v1815_v34 }
 0x876   :  { %v1821_v49 = vmul.f32 1.442695, %v1810_v63  ;;  %v1823_v55 = vmul.f32 1.442695, %v1811_v53  ;;  %v2041_v63 = vld [vmem:[%s3590_s7] ss:$0 sm:$0xff] }
 0x877   :  { %v1802_v9 = vpop.xlane.xlu1 %1801  ;;  %s2505_s7 = smov [#allocation8]  }
 0x878   :  { %v1812_v50 = vsub.f32 %v1778_v36, %v1802_v9  ;;  %2319 = vpow2.f32 %v1821_v49  ;;  %s1987_s12 = sshll.u32 %s2505_s7, 4  ;;  %s1988_s12 = int_to_ptr.vmem [resolvable:$true] %s1987_s12 }
 0x879   :  { %2321 = vpow2.f32 %v1819_v52  ;;  %s2471_s13 = scalar_lea.vmem %s1988_s12, 1024  ;;  %p2476_p2 = scmp.lt.s32.totalorder %s1988_s12, %s1988_s12 }
 0x87a   :  { %v1825_v54 = vmul.f32 1.442695, %v1812_v50  ;;  %p2472_p1 = scmp.ne.s32.totalorder %s1988_s12, %s2471_s13  ;;  %p2477_p3 = scmp.lt.s32.totalorder %s2471_s13, %s2471_s13 }
 0x87c   :  { %2323 = vpow2.f32 %v1825_v54  ;;  %p2478_p4 = por %p2477_p3, %p2476_p2 }
 0x87d   :  { %2325 = vpow2.f32 %v1823_v55 }
 0x87e   :  { %p2479_p5 = pnand %p2478_p4, %p2472_p1 }
 0x881   :  { %v3550_v14 = vpop.eup %2315 }
 0x882   :  { %v3553_v22 = vpop.eup %2317 }
 0x885   :  { %v3556_v16 = vpop.eup %2319 }
 0x886   :  { %v3559_v17 = vpop.eup %2321 }
 0x889   :  { %v3562_v18 = vpop.eup %2323 }
 0x88a   :  { %v3565_v19 = vpop.eup %2325 }
 0x8b8   :  { %v2133_v57 = vpop.f32.mrf.mxu0 }
 0x8b9   :  { %v1788_v56 = vadd.f32 %v2133_v57, %v3539_v2 }
 0x8ba   :  { %v1782_v12 = vpop.f32.mrf.mxu0 }
 0x8bb   :  { %v1783_v13 = vadd.f32 %v3539_v2, %v1782_v12  ;;  %1805 = vmax.xlane.f32.xlu1 %v1788_v56  ;;  %v161_v2 = vld [vmem:[#allocation7] sm:$0xff] }
 0x8bc   :  { %2164 = vmatprep.subr.mxu1 %v161_v2 }
 0x8bd   :  { %1803 = vmax.xlane.f32.xlu0 %v1783_v13  ;;  %2165 = vmatpush3.msra.mxu1 %v161_v2 }
 0x8bf   :  { %1833 = vadd.xlane.f32.xlu1 %v3550_v14 }
 0x8c1   :  { %1831 = vadd.xlane.f32.xlu0 %v3553_v22 }
 0x8c3   :  { %1837 = vadd.xlane.f32.xlu1 %v3556_v16 }
 0x8c5   :  { %1835 = vadd.xlane.f32.xlu0 %v3559_v17 }
 0x8c7   :  { %1841 = vadd.xlane.f32.xlu1 %v3562_v18 }
 0x8c9   :  { %1839 = vadd.xlane.f32.xlu0 %v3565_v19 }
 0x944   :  { %v1806_v24 = vpop.xlane.xlu1 %1805 }
 0x945   :  { %v1814_v26 = vsub.f32 %v1788_v56, %v1806_v24 }
 0x946   :  { %v1804_v47 = vpop.xlane.xlu0 %1803 }
 0x947   :  { %v1829_v28 = vmul.f32 1.442695, %v1814_v26  ;;  %v1813_v29 = vsub.f32 %v1783_v13, %v1804_v47 }
 0x948   :  { %v1834_v46 = vpop.xlane.xlu1 %1833 }
 0x949   :  { %2327 = vpow2.f32 %v1829_v28  ;;  %v1827_v35 = vmul.f32 1.442695, %v1813_v29 }
 0x94a   :  { %2329 = vrcp.f32 %v1834_v46  ;;  %v1832_v20 = vpop.xlane.xlu0 %1831 }
 0x94b   :  { %2331 = vpow2.f32 %v1827_v35 }
 0x94c   :  { %2333 = vrcp.f32 %v1832_v20  ;;  %v1838_v39 = vpop.xlane.xlu1 %1837 }
 0x94d   :  { %2335 = vrcp.f32 %v1838_v39 }
 0x94e   :  { %v1836_v3 = vpop.xlane.xlu0 %1835 }
 0x94f   :  { %2337 = vrcp.f32 %v1836_v3 }
 0x950   :  { %v1842_v33 = vpop.xlane.xlu1 %1841 }
 0x951   :  { %2339 = vrcp.f32 %v1842_v33 }
 0x952   :  { %v1840_v0 = vpop.xlane.xlu0 %1839 }
 0x953   :  { %2341 = vrcp.f32 %v1840_v0 }
 0x956   :  { %v2328_v58 = vpop.eup %2327 }
 0x957   :  { %v2330_v23 = vpop.eup %2329  ;;  %1845 = vadd.xlane.f32.xlu1 %v2328_v58 }
 0x958   :  { %v2332_v61 = vpop.eup %2331  ;;  %v1856_v4 = vmul.f32 %v2330_v23, %v3550_v14 }
 0x959   :  { %v2334_v36 = vpop.eup %2333  ;;  %1843 = vadd.xlane.f32.xlu0 %v2332_v61 }
 0x95a   :  { %v1855_v15 = vmul.f32 %v2334_v36, %v3553_v22  ;;  %v2336_v42 = vpop.eup %2335 }
 0x95b   :  { %v1858_v59 = vmul.f32 %v2336_v42, %v3556_v16 }
 0x95c   :  { %v2338_v6 = vpop.eup %2337  ;;  %2166 = vmatprep.mubr.f32.mxu1 %v1855_v15 }
 0x95d   :  { %2167 = vmatmul.mubr.f32.vlgmr.msra.gmra.mxu1 %v1856_v4  ;;  %v1857_v8 = vmul.f32 %v2338_v6, %v3559_v17 }
 0x95e   :  { %v2340_v62 = vpop.eup %2339 }
 0x95f   :  { %2169 = vmatprep.mubr.f32.mxu1 %v1857_v8  ;;  %v1860_v5 = vmul.f32 %v2340_v62, %v3562_v18 }
 0x960   :  { %v2342_v51 = vpop.eup %2341 }
 0x961   :  { %2170 = vmatmul.mubr.f32.gmra.mxu1 %v1858_v59  ;;  %v1859_v1 = vmul.f32 %v2342_v51, %v3565_v19 }
 0x963   :  { %2172 = vmatprep.mubr.f32.mxu1 %v1859_v1 }
 0x965   :  { %2173 = vmatmul.mubr.f32.gmra.mxu1 %v1860_v5 }
 0x9e0   :  { %v1846_v40 = vpop.xlane.xlu1 %1845 }
 0x9e1   :  { %2343 = vrcp.f32 %v1846_v40 }
 0x9e2   :  { %v1844_v41 = vpop.xlane.xlu0 %1843 }
 0x9e3   :  { %2345 = vrcp.f32 %v1844_v41 }
 0x9ee   :  { %v2344_v43 = vpop.eup %2343 }
 0x9ef   :  { %v1862_v60 = vmul.f32 %v2344_v43, %v2328_v58 }
 0x9f0   :  { %v2346_v44 = vpop.eup %2345 }
 0x9f1   :  { %v1861_v45 = vmul.f32 %v2346_v44, %v2332_v61 }
 0x9f3   :  { %2175 = vmatprep.mubr.f32.mxu1 %v1861_v45 }
 0x9f4   :  { %2176 = vmatmul.mubr.f32.gmra.mxu1 %v1862_v60 }
 0xa1d   :  { %v2168_v9 = vpop.f32.mrf.mxu1 }
 0xa1e   :  { %v1941_v34 = vadd.f32 %v2168_v9, %v2041_v63 }
 0xa1f   :  { %v1935_v11 = vpop.f32.mrf.mxu1 }
 0xa20   :  { %1975 = vst [vmem:[#allocation8 + $0x8] sm:$0xff] %v1941_v34  ;;  %v1936_v48 = vadd.f32 %v2041_v63, %v1935_v11 }
 0xa21   :  { %v2171_v49 = vpop.f32.mrf.mxu1 }
 0xa22   :  { %1974 = vst [vmem:[#allocation8] sm:$0xff] %v1936_v48  ;;  %v1951_v50 = vadd.f32 %v2171_v49, %v2041_v63 }
 0xa23   :  { %v1945_v52 = vpop.f32.mrf.mxu1 }
 0xa24   :  { %1977 = vst [vmem:[#allocation8 + $0x18] sm:$0xff] %v1951_v50  ;;  %v1946_v53 = vadd.f32 %v2041_v63, %v1945_v52 }
 0xa25   :  { %v2174_v54 = vpop.f32.mrf.mxu1 }
 0xa26   :  { %1976 = vst [vmem:[#allocation8 + $0x10] sm:$0xff] %v1946_v53  ;;  %v1961_v55 = vadd.f32 %v2174_v54, %v2041_v63 }
 0xa27   :  { %v1955_v57 = vpop.f32.mrf.mxu1 }
 0xa28   :  { %1979 = vst [vmem:[#allocation8 + $0x28] sm:$0xff] %v1961_v55  ;;  %v1956_v56 = vadd.f32 %v2041_v63, %v1955_v57 }
 0xa2a   :  { %1978 = vst [vmem:[#allocation8 + $0x20] sm:$0xff] %v1956_v56 }
 0xab4   :  { %v2177_v12 = vpop.f32.mrf.mxu1 }
 0xab5   :  { %v1971_v13 = vadd.f32 %v2177_v12, %v2041_v63 }
 0xab6   :  { %v1965_v14 = vpop.f32.mrf.mxu1 }
 0xab7   :  { %1981 = vst [vmem:[#allocation8 + $0x38] sm:$0xff] %v1971_v13  ;;  %v1966_v22 = vadd.f32 %v2041_v63, %v1965_v14 }
 0xab9   :  { %1980 = vst [vmem:[#allocation8 + $0x30] sm:$0xff] %v1966_v22 }
 0xaba   :  { %2482 = shalt.err (!%p2479_p5)
}
 0xabb   :  { %1993 = dma.vmem_to_hbm [thread:$0]  %s1988_s12, 1024, %s3591_s8, [#allocation4], %s2498_s30, %s2498_s30, %s2499_s9  }
 0xabc   :  { %2495 = dma.done.wait [#allocation4], 1024  }
 0xabd   :  { %2496 = vsyncadd [#allocation4], 4294966272 }
 0xabe   :  { %1997 = vsyncpa [#allocation3], 1 }
 0xabf   :  { %1998 = vsyncpa [#allocation6], 1 }
 0xac0   :  { %1999 = vsyncpa [#allocation4], 1 }

</bundles_post_ra>
